<compile_context>
chip_gen: v6e
topology: v6e:2x2x1
jax: 0.10.0
libtpu: 0.0.40
codegen_flags: <defaults>
</compile_context>

<pallas_src>
import jax
import jax.numpy as jnp
from jax.experimental import pallas as pl
from jax.experimental.pallas import tpu as pltpu

# ------------- small, module-consistent hyperparameters -------------
BATCH = 2           # batch size
N_FILT = 8          # N  : autoencoder filters
L_FILT = 16         # L  : filter length (samples)
HOP = L_FILT // 2   # encoder / decoder stride
B_CH = 4            # B  : bottleneck / residual channels
SC_CH = 6           # Sc : skip-connection channels
H_CH = 8            # H  : conv-block channels
P_KS = 3            # P  : conv-block kernel size (odd -> "same" length)
X_BLOCKS = 2        # X  : blocks per repeat
R_REPEATS = 2       # R  : repeats
NUM_SPK = 2         # speakers
NB = R_REPEATS * X_BLOCKS
DILATIONS = tuple(2 ** j for _ in range(R_REPEATS) for j in range(X_BLOCKS))  # (1,2,1,2)
T_FRAMES = 16                        # encoder output frames
SAMPLES = (T_FRAMES + 1) * HOP       # 136 raw audio samples
EPS = 1e-6


# ---------------- kernel helpers (run inside the kernel) ----------------
def _gln(y, w, b):
    # global layer norm over the full (T, C) block of one batch element.
    e = jnp.mean(y, keepdims=True)                   # (1, 1)
    var = jnp.mean((y - e) ** 2, keepdims=True)      # (1, 1)
    return (y - e) * jax.lax.rsqrt(var + EPS) * w + b   # w, b: (1, C)


def _prelu(y, a):
    return jnp.where(y > 0, y, a * y)                # a: SMEM scalar


# ---------------------------- Pallas kernel -----------------------------
def conv_tasnet_kernel(
    frames_ref, alpha_ref,
    wenc_ref, benc_ref,
    g0w_ref, g0b_ref, wb_ref, bb_ref,
    w1_ref, b1_ref, g1w_ref, g1b_ref,
    w2_ref, b2_ref, g2w_ref, g2b_ref,
    wns_ref, bns_ref,
    wm_ref, bm_ref, wdec_ref,
    out_ref,
):
    frames = frames_ref[0]                                            # (T, L)

    # ---- encoder: Conv1d(1, N, L, stride=L//2) as a framed matmul ----
    enc = jnp.dot(frames, wenc_ref[...],
                  preferred_element_type=jnp.float32) + benc_ref[...]  # (T, N)

    # ---- start_separ: gLN(N) -> Conv1d(N, B, 1) ----
    h = _gln(enc, g0w_ref[...], g0b_ref[...])
    x = jnp.dot(h, wb_ref[...],
                preferred_element_type=jnp.float32) + bb_ref[...]      # (T, B)

    skip = jnp.zeros((T_FRAMES, SC_CH), jnp.float32)

    # ---- TCN: all R*X BlockConv1D blocks chained, activations stay in VMEM ----
    for blk in range(NB):
        dil = DILATIONS[blk]
        pad = dil * (P_KS - 1) // 2
        a1 = alpha_ref[blk]                  # PReLU scalars from SMEM
        a2 = alpha_ref[NB + blk]

        # 1x1 conv -> PReLU -> gLN
        y = jnp.dot(x, w1_ref[blk],
                    preferred_element_type=jnp.float32) + b1_ref[blk]  # (T, H)
        y = _prelu(y, a1)
        y = _gln(y, g1w_ref[blk], g1b_ref[blk])

        # dilated Conv1d(H, H, P, dilation=dil, padding=pad): gather the K
        # zero-padded shifted taps and do ONE fused (T, K*H) @ (K*H, H) matmul
        # (no shift matrices, no O(T^2) MXU work, no (K,T,T) VMEM constant).
        zpad = jnp.zeros((pad, H_CH), jnp.float32)
        ypad = jnp.concatenate([zpad, y, zpad], axis=0)                # (T+2p, H)
        taps = jnp.concatenate(
            [ypad[k * dil:k * dil + T_FRAMES, :] for k in range(P_KS)],
            axis=1)                                                    # (T, K*H)
        y = jnp.dot(taps, w2_ref[blk],
                    preferred_element_type=jnp.float32) + b2_ref[blk]  # (T, H)
        y = _prelu(y, a2)
        y = _gln(y, g2w_ref[blk], g2b_ref[blk])

        # fused residual (next_block_conv) + skip (skip_con_conv) projection.
        proj = jnp.dot(y, wns_ref[blk],
                       preferred_element_type=jnp.float32) + bns_ref[blk]  # (T, B+Sc)
        x = x + proj[:, :B_CH]
        skip = skip + proj[:, B_CH:]

    # ---- end_separ: PReLU -> Conv1d(Sc, N*num_spk, 1) -> Sigmoid ----
    m = _prelu(skip, alpha_ref[2 * NB])
    m = jnp.dot(m, wm_ref[...],
                preferred_element_type=jnp.float32) + bm_ref[...]      # (T, N*S)
    m = 1.0 / (1.0 + jnp.exp(-m))                                      # sigmoid

    # ---- per-speaker masking + decoder frames (ConvTranspose1d as matmul) ----
    dec = []
    for s in range(NUM_SPK):
        masked = enc * m[:, s * N_FILT:(s + 1) * N_FILT]               # (T, N)
        dec.append(jnp.dot(masked, wdec_ref[...],
                           preferred_element_type=jnp.float32))        # (T, L)
    out_ref[0] = jnp.concatenate(dec, axis=1)                          # (T, S*L)


# ------------------------------ wrapper ---------------------------------
def _resident(shape):
    # full-array block with a constant index map -> stays resident in VMEM
    # across the batch grid axis.
    return pl.BlockSpec(shape, lambda b: (0,) * len(shape))


def conv_tasnet_forward(mix, params):
    """mix: (batch, SAMPLES) f32.  Returns {'s{i}_pred_object': (batch, SAMPLES)}."""
    batch = mix.shape[0]

    # frame the signal for the strided encoder conv (layout glue only).
    chunks = mix.astype(jnp.float32).reshape(batch, T_FRAMES + 1, HOP)
    frames = jnp.concatenate([chunks[:, :T_FRAMES], chunks[:, 1:]], axis=-1)  # (batch,T,L)

    # pack per-block weights for the in-kernel TCN loop.
    w2 = params["w2"].reshape(NB, P_KS * H_CH, H_CH)                   # fused-tap layout
    wns = jnp.concatenate([params["wn"], params["ws"]], axis=-1)       # (NB, H, B+Sc)
    bns = jnp.concatenate([params["bn"], params["bs"]], axis=-1)       # (NB, 1, B+Sc)
    alphas = jnp.concatenate(
        [params["a1"], params["a2"], params["a_end"]]).astype(jnp.float32)   # (2*NB+1,)

    weights = [
        params["wenc"], params["benc"],
        params["g0w"], params["g0b"], params["wb"], params["bb"],
        params["w1"], params["b1"], params["g1w"], params["g1b"],
        w2, params["b2"], params["g2w"], params["g2b"],
        wns, bns,
        params["wm"], params["bm"], params["wdec"],
    ]

    in_specs = [
        pl.BlockSpec((1, T_FRAMES, L_FILT), lambda b: (b, 0, 0)),
        pl.BlockSpec(memory_space=pltpu.MemorySpace.SMEM),     # PReLU alphas -> scalar path
    ] + [_resident(tuple(w.shape)) for w in weights]

    out = pl.pallas_call(
        conv_tasnet_kernel,
        grid=(batch,),
        in_specs=in_specs,
        out_specs=pl.BlockSpec((1, T_FRAMES, NUM_SPK * L_FILT), lambda b: (b, 0, 0)),
        out_shape=jax.ShapeDtypeStruct((batch, T_FRAMES, NUM_SPK * L_FILT), jnp.float32),
        compiler_params=pltpu.CompilerParams(dimension_semantics=("parallel",)),
    )(frames, alphas, *weights)

    # decoder overlap-add (ConvTranspose1d, stride=L//2) + bias: layout glue.
    out = out.reshape(batch, T_FRAMES, NUM_SPK, L_FILT)
    zeros = jnp.zeros((batch, 1, HOP), jnp.float32)
    result = {}
    for s in range(NUM_SPK):
        f = out[:, :, s, :]
        oadd = (jnp.concatenate([f[:, :, :HOP], zeros], axis=1)
                + jnp.concatenate([zeros, f[:, :, HOP:]], axis=1))     # (batch, T+1, HOP)
        result[f"s{s + 1}_pred_object"] = oadd.reshape(batch, -1) + params["bdec"]
    return result


# ---------------------- pure-JAX reference (checking) --------------------
def ref_forward(mix, params):
    batch = mix.shape[0]
    chunks = mix.astype(jnp.float32).reshape(batch, T_FRAMES + 1, HOP)
    frames = jnp.concatenate([chunks[:, :T_FRAMES], chunks[:, 1:]], axis=-1)

    def gln(y, w, b):
        e = jnp.mean(y, axis=(1, 2), keepdims=True)
        v = jnp.mean((y - e) ** 2, axis=(1, 2), keepdims=True)
        return (y - e) / jnp.sqrt(v + EPS) * w + b

    def prelu(y, a):
        return jnp.where(y > 0, y, a * y)

    enc = jnp.einsum("btl,ln->btn", frames, params["wenc"]) + params["benc"]
    h = gln(enc, params["g0w"], params["g0b"])
    x = jnp.einsum("btn,nc->btc", h, params["wb"]) + params["bb"]

    skip = jnp.zeros((batch, T_FRAMES, SC_CH), jnp.float32)
    for blk in range(NB):
        dil = DILATIONS[blk]
        pad = dil * (P_KS - 1) // 2
        y = jnp.einsum("btc,ch->bth", x, params["w1"][blk]) + params["b1"][blk]
        y = prelu(y, params["a1"][blk])
        y = gln(y, params["g1w"][blk], params["g1b"][blk])
        ypad = jnp.pad(y, ((0, 0), (pad, pad), (0, 0)))
        acc = jnp.zeros((batch, T_FRAMES, H_CH), jnp.float32)
        for k in range(P_KS):
            acc = acc + jnp.einsum("bth,hg->btg",
                                   ypad[:, k * dil:k * dil + T_FRAMES, :],
                                   params["w2"][blk, k])
        y = acc + params["b2"][blk]
        y = prelu(y, params["a2"][blk])
        y = gln(y, params["g2w"][blk], params["g2b"][blk])
        new_x = jnp.einsum("bth,hc->btc", y, params["wn"][blk]) + params["bn"][blk]
        new_skip = jnp.einsum("bth,hs->bts", y, params["ws"][blk]) + params["bs"][blk]
        x = x + new_x
        skip = skip + new_skip

    m = prelu(skip, params["a_end"][0])
    m = jnp.einsum("bts,sn->btn", m, params["wm"]) + params["bm"]
    m = jax.nn.sigmoid(m)

    zeros = jnp.zeros((batch, 1, HOP), jnp.float32)
    result = {}
    for s in range(NUM_SPK):
        masked = enc * m[..., s * N_FILT:(s + 1) * N_FILT]
        f = jnp.einsum("btn,nl->btl", masked, params["wdec"])
        oadd = (jnp.concatenate([f[:, :, :HOP], zeros], axis=1)
                + jnp.concatenate([zeros, f[:, :, HOP:]], axis=1))
        result[f"s{s + 1}_pred_object"] = oadd.reshape(batch, -1) + params["bdec"]
    return result


if __name__ == "__main__":
    key = jax.random.PRNGKey(0)
    ks = jax.random.split(key, 24)
    f32 = jnp.float32

    # Deterministic synthetic parameters (channels-last layouts for matmuls;
    # the reference uses the exact same tensors in the unfused per-op form).
    params = {
        "wenc": 0.3 * jax.random.normal(ks[0], (L_FILT, N_FILT), f32),
        "benc": 0.1 * jax.random.normal(ks[1], (1, N_FILT), f32),
        "g0w": 1.0 + 0.1 * jax.random.normal(ks[2], (1, N_FILT), f32),
        "g0b": 0.1 * jax.random.normal(ks[3], (1, N_FILT), f32),
        "wb": 0.3 * jax.random.normal(ks[4], (N_FILT, B_CH), f32),
        "bb": 0.1 * jax.random.normal(ks[5], (1, B_CH), f32),
        "w1": 0.3 * jax.random.normal(ks[6], (NB, B_CH, H_CH), f32),
        "b1": 0.1 * jax.random.normal(ks[7], (NB, 1, H_CH), f32),
        "g1w": 1.0 + 0.1 * jax.random.normal(ks[8], (NB, 1, H_CH), f32),
        "g1b": 0.1 * jax.random.normal(ks[9], (NB, 1, H_CH), f32),
        "w2": 0.3 * jax.random.normal(ks[10], (NB, P_KS, H_CH, H_CH), f32),
        "b2": 0.1 * jax.random.normal(ks[11], (NB, 1, H_CH), f32),
        "g2w": 1.0 + 0.1 * jax.random.normal(ks[12], (NB, 1, H_CH), f32),
        "g2b": 0.1 * jax.random.normal(ks[13], (NB, 1, H_CH), f32),
        "wn": 0.3 * jax.random.normal(ks[14], (NB, H_CH, B_CH), f32),
        "bn": 0.1 * jax.random.normal(ks[15], (NB, 1, B_CH), f32),
        "ws": 0.3 * jax.random.normal(ks[16], (NB, H_CH, SC_CH), f32),
        "bs": 0.1 * jax.random.normal(ks[17], (NB, 1, SC_CH), f32),
        "a1": 0.25 + 0.05 * jax.random.normal(ks[18], (NB,), f32),
        "a2": 0.25 + 0.05 * jax.random.normal(ks[19], (NB,), f32),
        "a_end": jnp.array([0.25], f32),
        "wm": 0.3 * jax.random.normal(ks[20], (SC_CH, N_FILT * NUM_SPK), f32),
        "bm": 0.1 * jax.random.normal(ks[21], (1, N_FILT * NUM_SPK), f32),
        "wdec": 0.3 * jax.random.normal(ks[22], (N_FILT, L_FILT), f32),
        "bdec": jnp.array(0.05, f32),
    }

    mix = jax.random.normal(ks[23], (BATCH, SAMPLES), f32)   # raw waveform (B, samples)

    fwd = jax.jit(lambda m: conv_tasnet_forward(m, params))
    out = jax.block_until_ready(fwd(mix))
    ref = ref_forward(mix, params)

    for k in sorted(ref.keys()):
        assert out[k].shape == (BATCH, SAMPLES), (k, out[k].shape)
        assert jnp.allclose(out[k], ref[k], atol=1e-3, rtol=1e-3), k

    print("KERNEL_OK")
</pallas_src>

<mosaic_0001>
module attributes {stable_mosaic.version = 11 : i64} {
  func.func @conv_tasnet_kernel(%arg0: i32, %arg1: memref<1x16x16xf32, #tpu.memory_space<vmem>>, %arg2: memref<9xf32, #tpu.memory_space<smem>>, %arg3: memref<16x8xf32, #tpu.memory_space<vmem>>, %arg4: memref<1x8xf32, #tpu.memory_space<vmem>>, %arg5: memref<1x8xf32, #tpu.memory_space<vmem>>, %arg6: memref<1x8xf32, #tpu.memory_space<vmem>>, %arg7: memref<8x4xf32, #tpu.memory_space<vmem>>, %arg8: memref<1x4xf32, #tpu.memory_space<vmem>>, %arg9: memref<4x4x8xf32, #tpu.memory_space<vmem>>, %arg10: memref<4x1x8xf32, #tpu.memory_space<vmem>>, %arg11: memref<4x1x8xf32, #tpu.memory_space<vmem>>, %arg12: memref<4x1x8xf32, #tpu.memory_space<vmem>>, %arg13: memref<4x24x8xf32, #tpu.memory_space<vmem>>, %arg14: memref<4x1x8xf32, #tpu.memory_space<vmem>>, %arg15: memref<4x1x8xf32, #tpu.memory_space<vmem>>, %arg16: memref<4x1x8xf32, #tpu.memory_space<vmem>>, %arg17: memref<4x8x10xf32, #tpu.memory_space<vmem>>, %arg18: memref<4x1x10xf32, #tpu.memory_space<vmem>>, %arg19: memref<6x16xf32, #tpu.memory_space<vmem>>, %arg20: memref<1x16xf32, #tpu.memory_space<vmem>>, %arg21: memref<8x16xf32, #tpu.memory_space<vmem>>, %arg22: memref<1x16x32xf32, #tpu.memory_space<vmem>>) attributes {dimension_semantics = [#tpu.dimension_semantics<parallel>], iteration_bounds = array<i64: 2>, scalar_prefetch = 0 : i64, scratch_operands = 0 : i64, tpu.core_type = #tpu.core_type<tc>, window_params = [{transform_indices = @transform_0, window_bounds = array<i64: 1, 16, 16>}, {transform_indices = @transform_1, window_bounds = array<i64: 9>}, {pipeline_mode = #tpu.pipeline_mode<synchronous>, transform_indices = @transform_2, window_bounds = array<i64: 16, 8>}, {pipeline_mode = #tpu.pipeline_mode<synchronous>, transform_indices = @transform_3, window_bounds = array<i64: 1, 8>}, {pipeline_mode = #tpu.pipeline_mode<synchronous>, transform_indices = @transform_4, window_bounds = array<i64: 1, 8>}, {pipeline_mode = #tpu.pipeline_mode<synchronous>, transform_indices = @transform_5, window_bounds = array<i64: 1, 8>}, {pipeline_mode = #tpu.pipeline_mode<synchronous>, transform_indices = @transform_6, window_bounds = array<i64: 8, 4>}, {pipeline_mode = #tpu.pipeline_mode<synchronous>, transform_indices = @transform_7, window_bounds = array<i64: 1, 4>}, {pipeline_mode = #tpu.pipeline_mode<synchronous>, transform_indices = @transform_8, window_bounds = array<i64: 4, 4, 8>}, {pipeline_mode = #tpu.pipeline_mode<synchronous>, transform_indices = @transform_9, window_bounds = array<i64: 4, 1, 8>}, {pipeline_mode = #tpu.pipeline_mode<synchronous>, transform_indices = @transform_10, window_bounds = array<i64: 4, 1, 8>}, {pipeline_mode = #tpu.pipeline_mode<synchronous>, transform_indices = @transform_11, window_bounds = array<i64: 4, 1, 8>}, {pipeline_mode = #tpu.pipeline_mode<synchronous>, transform_indices = @transform_12, window_bounds = array<i64: 4, 24, 8>}, {pipeline_mode = #tpu.pipeline_mode<synchronous>, transform_indices = @transform_13, window_bounds = array<i64: 4, 1, 8>}, {pipeline_mode = #tpu.pipeline_mode<synchronous>, transform_indices = @transform_14, window_bounds = array<i64: 4, 1, 8>}, {pipeline_mode = #tpu.pipeline_mode<synchronous>, transform_indices = @transform_15, window_bounds = array<i64: 4, 1, 8>}, {pipeline_mode = #tpu.pipeline_mode<synchronous>, transform_indices = @transform_16, window_bounds = array<i64: 4, 8, 10>}, {pipeline_mode = #tpu.pipeline_mode<synchronous>, transform_indices = @transform_17, window_bounds = array<i64: 4, 1, 10>}, {pipeline_mode = #tpu.pipeline_mode<synchronous>, transform_indices = @transform_18, window_bounds = array<i64: 6, 16>}, {pipeline_mode = #tpu.pipeline_mode<synchronous>, transform_indices = @transform_19, window_bounds = array<i64: 1, 16>}, {pipeline_mode = #tpu.pipeline_mode<synchronous>, transform_indices = @transform_20, window_bounds = array<i64: 8, 16>}, {transform_indices = @transform_21, window_bounds = array<i64: 1, 16, 32>}]} {
    %c0 = arith.constant 0 : index
    %c0_0 = arith.constant 0 : index
    %c0_1 = arith.constant 0 : index
    %0 = vector.load %arg1[%c0, %c0_0, %c0_1] : memref<1x16x16xf32, #tpu.memory_space<vmem>>, vector<1x16x16xf32>
    %1 = vector.shape_cast %0 : vector<1x16x16xf32> to vector<16x16xf32>
    %c0_2 = arith.constant 0 : index
    %c0_3 = arith.constant 0 : index
    %2 = vector.load %arg3[%c0_2, %c0_3] : memref<16x8xf32, #tpu.memory_space<vmem>>, vector<16x8xf32>
    %cst = arith.constant dense<0.000000e+00> : vector<16x8xf32>
    %3 = tpu.matmul %1, %2, %cst {dimension_numbers = #tpu.dot_dimension_numbers<[1], [0], [0], [1], [0, 0, 1, 1], [], []>} : vector<16x16xf32>, vector<16x8xf32>, vector<16x8xf32> -> vector<16x8xf32>
    %c0_4 = arith.constant 0 : index
    %c0_5 = arith.constant 0 : index
    %4 = vector.load %arg4[%c0_4, %c0_5] : memref<1x8xf32, #tpu.memory_space<vmem>>, vector<1x8xf32>
    %5 = vector.broadcast %4 : vector<1x8xf32> to vector<16x8xf32>
    %6 = arith.addf %3, %5 : vector<16x8xf32>
    %c0_6 = arith.constant 0 : index
    %c0_7 = arith.constant 0 : index
    %7 = vector.load %arg5[%c0_6, %c0_7] : memref<1x8xf32, #tpu.memory_space<vmem>>, vector<1x8xf32>
    %c0_8 = arith.constant 0 : index
    %c0_9 = arith.constant 0 : index
    %8 = vector.load %arg6[%c0_8, %c0_9] : memref<1x8xf32, #tpu.memory_space<vmem>>, vector<1x8xf32>
    %9 = vector.shape_cast %6 : vector<16x8xf32> to vector<1x16x8xf32>
    %cst_10 = arith.constant dense<0.000000e+00> : vector<1xf32>
    %10 = vector.multi_reduction <add>, %9, %cst_10 [1, 2] : vector<1x16x8xf32> to vector<1xf32>
    %11 = vector.shape_cast %10 : vector<1xf32> to vector<1x1x1xf32>
    %12 = vector.extract %11[0, 0, 0] : f32 from vector<1x1x1xf32>
    %13 = vector.broadcast %12 : f32 to vector<1x1xf32>
    %cst_11 = arith.constant 1.280000e+02 : f32
    %14 = vector.broadcast %cst_11 : f32 to vector<1x1xf32>
    %15 = arith.divf %13, %14 : vector<1x1xf32>
    %16 = vector.broadcast %15 : vector<1x1xf32> to vector<16x8xf32>
    %17 = arith.subf %6, %16 : vector<16x8xf32>
    %18 = arith.mulf %17, %17 : vector<16x8xf32>
    %19 = vector.shape_cast %18 : vector<16x8xf32> to vector<1x16x8xf32>
    %cst_12 = arith.constant dense<0.000000e+00> : vector<1xf32>
    %20 = vector.multi_reduction <add>, %19, %cst_12 [1, 2] : vector<1x16x8xf32> to vector<1xf32>
    %21 = vector.shape_cast %20 : vector<1xf32> to vector<1x1x1xf32>
    %22 = vector.extract %21[0, 0, 0] : f32 from vector<1x1x1xf32>
    %23 = vector.broadcast %22 : f32 to vector<1x1xf32>
    %cst_13 = arith.constant 1.280000e+02 : f32
    %24 = vector.broadcast %cst_13 : f32 to vector<1x1xf32>
    %25 = arith.divf %23, %24 : vector<1x1xf32>
    %26 = vector.broadcast %15 : vector<1x1xf32> to vector<16x8xf32>
    %27 = arith.subf %6, %26 : vector<16x8xf32>
    %cst_14 = arith.constant 9.99999997E-7 : f32
    %28 = vector.broadcast %cst_14 : f32 to vector<1x1xf32>
    %29 = arith.addf %25, %28 : vector<1x1xf32>
    %30 = math.rsqrt %29 : vector<1x1xf32>
    %31 = vector.broadcast %30 : vector<1x1xf32> to vector<16x8xf32>
    %32 = arith.mulf %27, %31 : vector<16x8xf32>
    %33 = vector.broadcast %7 : vector<1x8xf32> to vector<16x8xf32>
    %34 = arith.mulf %32, %33 : vector<16x8xf32>
    %35 = vector.broadcast %8 : vector<1x8xf32> to vector<16x8xf32>
    %36 = arith.addf %34, %35 : vector<16x8xf32>
    %c0_15 = arith.constant 0 : index
    %c0_16 = arith.constant 0 : index
    %37 = vector.load %arg7[%c0_15, %c0_16] : memref<8x4xf32, #tpu.memory_space<vmem>>, vector<8x4xf32>
    %cst_17 = arith.constant dense<0.000000e+00> : vector<16x4xf32>
    %38 = tpu.matmul %36, %37, %cst_17 {dimension_numbers = #tpu.dot_dimension_numbers<[1], [0], [0], [1], [0, 0, 1, 1], [], []>} : vector<16x8xf32>, vector<8x4xf32>, vector<16x4xf32> -> vector<16x4xf32>
    %c0_18 = arith.constant 0 : index
    %c0_19 = arith.constant 0 : index
    %39 = vector.load %arg8[%c0_18, %c0_19] : memref<1x4xf32, #tpu.memory_space<vmem>>, vector<1x4xf32>
    %40 = vector.broadcast %39 : vector<1x4xf32> to vector<16x4xf32>
    %41 = arith.addf %38, %40 : vector<16x4xf32>
    %cst_20 = arith.constant 0.000000e+00 : f32
    %42 = vector.broadcast %cst_20 : f32 to vector<16x6xf32>
    %c0_21 = arith.constant 0 : index
    %43 = memref.load %arg2[%c0_21] : memref<9xf32, #tpu.memory_space<smem>>
    %c4 = arith.constant 4 : index
    %44 = memref.load %arg2[%c4] : memref<9xf32, #tpu.memory_space<smem>>
    %c0_22 = arith.constant 0 : index
    %c0_23 = arith.constant 0 : index
    %c0_24 = arith.constant 0 : index
    %45 = vector.load %arg9[%c0_22, %c0_23, %c0_24] : memref<4x4x8xf32, #tpu.memory_space<vmem>>, vector<1x4x8xf32>
    %46 = vector.shape_cast %45 : vector<1x4x8xf32> to vector<4x8xf32>
    %cst_25 = arith.constant dense<0.000000e+00> : vector<16x8xf32>
    %47 = tpu.matmul %41, %46, %cst_25 {dimension_numbers = #tpu.dot_dimension_numbers<[1], [0], [0], [1], [0, 0, 1, 1], [], []>} : vector<16x4xf32>, vector<4x8xf32>, vector<16x8xf32> -> vector<16x8xf32>
    %c0_26 = arith.constant 0 : index
    %c0_27 = arith.constant 0 : index
    %c0_28 = arith.constant 0 : index
    %48 = vector.load %arg10[%c0_26, %c0_27, %c0_28] : memref<4x1x8xf32, #tpu.memory_space<vmem>>, vector<1x1x8xf32>
    %49 = vector.shape_cast %48 : vector<1x1x8xf32> to vector<1x8xf32>
    %50 = vector.broadcast %49 : vector<1x8xf32> to vector<16x8xf32>
    %51 = arith.addf %47, %50 : vector<16x8xf32>
    %cst_29 = arith.constant 0.000000e+00 : f32
    %52 = vector.broadcast %cst_29 : f32 to vector<16x8xf32>
    %53 = arith.cmpf ogt, %51, %52 : vector<16x8xf32>
    %54 = vector.broadcast %43 : f32 to vector<16x8xf32>
    %55 = arith.mulf %54, %51 : vector<16x8xf32>
    %56 = arith.select %53, %51, %55 : vector<16x8xi1>, vector<16x8xf32>
    %c0_30 = arith.constant 0 : index
    %c0_31 = arith.constant 0 : index
    %c0_32 = arith.constant 0 : index
    %57 = vector.load %arg11[%c0_30, %c0_31, %c0_32] : memref<4x1x8xf32, #tpu.memory_space<vmem>>, vector<1x1x8xf32>
    %58 = vector.shape_cast %57 : vector<1x1x8xf32> to vector<1x8xf32>
    %c0_33 = arith.constant 0 : index
    %c0_34 = arith.constant 0 : index
    %c0_35 = arith.constant 0 : index
    %59 = vector.load %arg12[%c0_33, %c0_34, %c0_35] : memref<4x1x8xf32, #tpu.memory_space<vmem>>, vector<1x1x8xf32>
    %60 = vector.shape_cast %59 : vector<1x1x8xf32> to vector<1x8xf32>
    %61 = vector.shape_cast %56 : vector<16x8xf32> to vector<1x16x8xf32>
    %cst_36 = arith.constant dense<0.000000e+00> : vector<1xf32>
    %62 = vector.multi_reduction <add>, %61, %cst_36 [1, 2] : vector<1x16x8xf32> to vector<1xf32>
    %63 = vector.shape_cast %62 : vector<1xf32> to vector<1x1x1xf32>
    %64 = vector.extract %63[0, 0, 0] : f32 from vector<1x1x1xf32>
    %65 = vector.broadcast %64 : f32 to vector<1x1xf32>
    %cst_37 = arith.constant 1.280000e+02 : f32
    %66 = vector.broadcast %cst_37 : f32 to vector<1x1xf32>
    %67 = arith.divf %65, %66 : vector<1x1xf32>
    %68 = vector.broadcast %67 : vector<1x1xf32> to vector<16x8xf32>
    %69 = arith.subf %56, %68 : vector<16x8xf32>
    %70 = arith.mulf %69, %69 : vector<16x8xf32>
    %71 = vector.shape_cast %70 : vector<16x8xf32> to vector<1x16x8xf32>
    %cst_38 = arith.constant dense<0.000000e+00> : vector<1xf32>
    %72 = vector.multi_reduction <add>, %71, %cst_38 [1, 2] : vector<1x16x8xf32> to vector<1xf32>
    %73 = vector.shape_cast %72 : vector<1xf32> to vector<1x1x1xf32>
    %74 = vector.extract %73[0, 0, 0] : f32 from vector<1x1x1xf32>
    %75 = vector.broadcast %74 : f32 to vector<1x1xf32>
    %cst_39 = arith.constant 1.280000e+02 : f32
    %76 = vector.broadcast %cst_39 : f32 to vector<1x1xf32>
    %77 = arith.divf %75, %76 : vector<1x1xf32>
    %78 = vector.broadcast %67 : vector<1x1xf32> to vector<16x8xf32>
    %79 = arith.subf %56, %78 : vector<16x8xf32>
    %cst_40 = arith.constant 9.99999997E-7 : f32
    %80 = vector.broadcast %cst_40 : f32 to vector<1x1xf32>
    %81 = arith.addf %77, %80 : vector<1x1xf32>
    %82 = math.rsqrt %81 : vector<1x1xf32>
    %83 = vector.broadcast %82 : vector<1x1xf32> to vector<16x8xf32>
    %84 = arith.mulf %79, %83 : vector<16x8xf32>
    %85 = vector.broadcast %58 : vector<1x8xf32> to vector<16x8xf32>
    %86 = arith.mulf %84, %85 : vector<16x8xf32>
    %87 = vector.broadcast %60 : vector<1x8xf32> to vector<16x8xf32>
    %88 = arith.addf %86, %87 : vector<16x8xf32>
    %cst_41 = arith.constant 0.000000e+00 : f32
    %89 = vector.broadcast %cst_41 : f32 to vector<1x8xf32>
    %90 = tpu.concatenate %89, %88, %89 in 0 : vector<1x8xf32>, vector<16x8xf32>, vector<1x8xf32> -> vector<18x8xf32>
    %91 = vector.extract_strided_slice %90 {offsets = [0, 0], sizes = [16, 8], strides = [1, 1]} : vector<18x8xf32> to vector<16x8xf32>
    %92 = vector.extract_strided_slice %90 {offsets = [1, 0], sizes = [16, 8], strides = [1, 1]} : vector<18x8xf32> to vector<16x8xf32>
    %93 = vector.extract_strided_slice %90 {offsets = [2, 0], sizes = [16, 8], strides = [1, 1]} : vector<18x8xf32> to vector<16x8xf32>
    %94 = tpu.concatenate %91, %92, %93 in 1 : vector<16x8xf32>, vector<16x8xf32>, vector<16x8xf32> -> vector<16x24xf32>
    %c0_42 = arith.constant 0 : index
    %c0_43 = arith.constant 0 : index
    %c0_44 = arith.constant 0 : index
    %95 = vector.load %arg13[%c0_42, %c0_43, %c0_44] : memref<4x24x8xf32, #tpu.memory_space<vmem>>, vector<1x24x8xf32>
    %96 = vector.shape_cast %95 : vector<1x24x8xf32> to vector<24x8xf32>
    %cst_45 = arith.constant dense<0.000000e+00> : vector<16x8xf32>
    %97 = tpu.matmul %94, %96, %cst_45 {dimension_numbers = #tpu.dot_dimension_numbers<[1], [0], [0], [1], [0, 0, 1, 1], [], []>} : vector<16x24xf32>, vector<24x8xf32>, vector<16x8xf32> -> vector<16x8xf32>
    %c0_46 = arith.constant 0 : index
    %c0_47 = arith.constant 0 : index
    %c0_48 = arith.constant 0 : index
    %98 = vector.load %arg14[%c0_46, %c0_47, %c0_48] : memref<4x1x8xf32, #tpu.memory_space<vmem>>, vector<1x1x8xf32>
    %99 = vector.shape_cast %98 : vector<1x1x8xf32> to vector<1x8xf32>
    %100 = vector.broadcast %99 : vector<1x8xf32> to vector<16x8xf32>
    %101 = arith.addf %97, %100 : vector<16x8xf32>
    %cst_49 = arith.constant 0.000000e+00 : f32
    %102 = vector.broadcast %cst_49 : f32 to vector<16x8xf32>
    %103 = arith.cmpf ogt, %101, %102 : vector<16x8xf32>
    %104 = vector.broadcast %44 : f32 to vector<16x8xf32>
    %105 = arith.mulf %104, %101 : vector<16x8xf32>
    %106 = arith.select %103, %101, %105 : vector<16x8xi1>, vector<16x8xf32>
    %c0_50 = arith.constant 0 : index
    %c0_51 = arith.constant 0 : index
    %c0_52 = arith.constant 0 : index
    %107 = vector.load %arg15[%c0_50, %c0_51, %c0_52] : memref<4x1x8xf32, #tpu.memory_space<vmem>>, vector<1x1x8xf32>
    %108 = vector.shape_cast %107 : vector<1x1x8xf32> to vector<1x8xf32>
    %c0_53 = arith.constant 0 : index
    %c0_54 = arith.constant 0 : index
    %c0_55 = arith.constant 0 : index
    %109 = vector.load %arg16[%c0_53, %c0_54, %c0_55] : memref<4x1x8xf32, #tpu.memory_space<vmem>>, vector<1x1x8xf32>
    %110 = vector.shape_cast %109 : vector<1x1x8xf32> to vector<1x8xf32>
    %111 = vector.shape_cast %106 : vector<16x8xf32> to vector<1x16x8xf32>
    %cst_56 = arith.constant dense<0.000000e+00> : vector<1xf32>
    %112 = vector.multi_reduction <add>, %111, %cst_56 [1, 2] : vector<1x16x8xf32> to vector<1xf32>
    %113 = vector.shape_cast %112 : vector<1xf32> to vector<1x1x1xf32>
    %114 = vector.extract %113[0, 0, 0] : f32 from vector<1x1x1xf32>
    %115 = vector.broadcast %114 : f32 to vector<1x1xf32>
    %cst_57 = arith.constant 1.280000e+02 : f32
    %116 = vector.broadcast %cst_57 : f32 to vector<1x1xf32>
    %117 = arith.divf %115, %116 : vector<1x1xf32>
    %118 = vector.broadcast %117 : vector<1x1xf32> to vector<16x8xf32>
    %119 = arith.subf %106, %118 : vector<16x8xf32>
    %120 = arith.mulf %119, %119 : vector<16x8xf32>
    %121 = vector.shape_cast %120 : vector<16x8xf32> to vector<1x16x8xf32>
    %cst_58 = arith.constant dense<0.000000e+00> : vector<1xf32>
    %122 = vector.multi_reduction <add>, %121, %cst_58 [1, 2] : vector<1x16x8xf32> to vector<1xf32>
    %123 = vector.shape_cast %122 : vector<1xf32> to vector<1x1x1xf32>
    %124 = vector.extract %123[0, 0, 0] : f32 from vector<1x1x1xf32>
    %125 = vector.broadcast %124 : f32 to vector<1x1xf32>
    %cst_59 = arith.constant 1.280000e+02 : f32
    %126 = vector.broadcast %cst_59 : f32 to vector<1x1xf32>
    %127 = arith.divf %125, %126 : vector<1x1xf32>
    %128 = vector.broadcast %117 : vector<1x1xf32> to vector<16x8xf32>
    %129 = arith.subf %106, %128 : vector<16x8xf32>
    %cst_60 = arith.constant 9.99999997E-7 : f32
    %130 = vector.broadcast %cst_60 : f32 to vector<1x1xf32>
    %131 = arith.addf %127, %130 : vector<1x1xf32>
    %132 = math.rsqrt %131 : vector<1x1xf32>
    %133 = vector.broadcast %132 : vector<1x1xf32> to vector<16x8xf32>
    %134 = arith.mulf %129, %133 : vector<16x8xf32>
    %135 = vector.broadcast %108 : vector<1x8xf32> to vector<16x8xf32>
    %136 = arith.mulf %134, %135 : vector<16x8xf32>
    %137 = vector.broadcast %110 : vector<1x8xf32> to vector<16x8xf32>
    %138 = arith.addf %136, %137 : vector<16x8xf32>
    %c0_61 = arith.constant 0 : index
    %c0_62 = arith.constant 0 : index
    %c0_63 = arith.constant 0 : index
    %139 = vector.load %arg17[%c0_61, %c0_62, %c0_63] : memref<4x8x10xf32, #tpu.memory_space<vmem>>, vector<1x8x10xf32>
    %140 = vector.shape_cast %139 : vector<1x8x10xf32> to vector<8x10xf32>
    %cst_64 = arith.constant dense<0.000000e+00> : vector<16x10xf32>
    %141 = tpu.matmul %138, %140, %cst_64 {dimension_numbers = #tpu.dot_dimension_numbers<[1], [0], [0], [1], [0, 0, 1, 1], [], []>} : vector<16x8xf32>, vector<8x10xf32>, vector<16x10xf32> -> vector<16x10xf32>
    %c0_65 = arith.constant 0 : index
    %c0_66 = arith.constant 0 : index
    %c0_67 = arith.constant 0 : index
    %142 = vector.load %arg18[%c0_65, %c0_66, %c0_67] : memref<4x1x10xf32, #tpu.memory_space<vmem>>, vector<1x1x10xf32>
    %143 = vector.shape_cast %142 : vector<1x1x10xf32> to vector<1x10xf32>
    %144 = vector.broadcast %143 : vector<1x10xf32> to vector<16x10xf32>
    %145 = arith.addf %141, %144 : vector<16x10xf32>
    %146 = vector.extract_strided_slice %145 {offsets = [0, 0], sizes = [16, 4], strides = [1, 1]} : vector<16x10xf32> to vector<16x4xf32>
    %147 = arith.addf %41, %146 : vector<16x4xf32>
    %148 = vector.extract_strided_slice %145 {offsets = [0, 4], sizes = [16, 6], strides = [1, 1]} : vector<16x10xf32> to vector<16x6xf32>
    %149 = arith.addf %42, %148 : vector<16x6xf32>
    %c1 = arith.constant 1 : index
    %150 = memref.load %arg2[%c1] : memref<9xf32, #tpu.memory_space<smem>>
    %c5 = arith.constant 5 : index
    %151 = memref.load %arg2[%c5] : memref<9xf32, #tpu.memory_space<smem>>
    %c1_68 = arith.constant 1 : index
    %c0_69 = arith.constant 0 : index
    %c0_70 = arith.constant 0 : index
    %152 = vector.load %arg9[%c1_68, %c0_69, %c0_70] : memref<4x4x8xf32, #tpu.memory_space<vmem>>, vector<1x4x8xf32>
    %153 = vector.shape_cast %152 : vector<1x4x8xf32> to vector<4x8xf32>
    %cst_71 = arith.constant dense<0.000000e+00> : vector<16x8xf32>
    %154 = tpu.matmul %147, %153, %cst_71 {dimension_numbers = #tpu.dot_dimension_numbers<[1], [0], [0], [1], [0, 0, 1, 1], [], []>} : vector<16x4xf32>, vector<4x8xf32>, vector<16x8xf32> -> vector<16x8xf32>
    %c1_72 = arith.constant 1 : index
    %c0_73 = arith.constant 0 : index
    %c0_74 = arith.constant 0 : index
    %155 = vector.load %arg10[%c1_72, %c0_73, %c0_74] : memref<4x1x8xf32, #tpu.memory_space<vmem>>, vector<1x1x8xf32>
    %156 = vector.shape_cast %155 : vector<1x1x8xf32> to vector<1x8xf32>
    %157 = vector.broadcast %156 : vector<1x8xf32> to vector<16x8xf32>
    %158 = arith.addf %154, %157 : vector<16x8xf32>
    %cst_75 = arith.constant 0.000000e+00 : f32
    %159 = vector.broadcast %cst_75 : f32 to vector<16x8xf32>
    %160 = arith.cmpf ogt, %158, %159 : vector<16x8xf32>
    %161 = vector.broadcast %150 : f32 to vector<16x8xf32>
    %162 = arith.mulf %161, %158 : vector<16x8xf32>
    %163 = arith.select %160, %158, %162 : vector<16x8xi1>, vector<16x8xf32>
    %c1_76 = arith.constant 1 : index
    %c0_77 = arith.constant 0 : index
    %c0_78 = arith.constant 0 : index
    %164 = vector.load %arg11[%c1_76, %c0_77, %c0_78] : memref<4x1x8xf32, #tpu.memory_space<vmem>>, vector<1x1x8xf32>
    %165 = vector.shape_cast %164 : vector<1x1x8xf32> to vector<1x8xf32>
    %c1_79 = arith.constant 1 : index
    %c0_80 = arith.constant 0 : index
    %c0_81 = arith.constant 0 : index
    %166 = vector.load %arg12[%c1_79, %c0_80, %c0_81] : memref<4x1x8xf32, #tpu.memory_space<vmem>>, vector<1x1x8xf32>
    %167 = vector.shape_cast %166 : vector<1x1x8xf32> to vector<1x8xf32>
    %168 = vector.shape_cast %163 : vector<16x8xf32> to vector<1x16x8xf32>
    %cst_82 = arith.constant dense<0.000000e+00> : vector<1xf32>
    %169 = vector.multi_reduction <add>, %168, %cst_82 [1, 2] : vector<1x16x8xf32> to vector<1xf32>
    %170 = vector.shape_cast %169 : vector<1xf32> to vector<1x1x1xf32>
    %171 = vector.extract %170[0, 0, 0] : f32 from vector<1x1x1xf32>
    %172 = vector.broadcast %171 : f32 to vector<1x1xf32>
    %cst_83 = arith.constant 1.280000e+02 : f32
    %173 = vector.broadcast %cst_83 : f32 to vector<1x1xf32>
    %174 = arith.divf %172, %173 : vector<1x1xf32>
    %175 = vector.broadcast %174 : vector<1x1xf32> to vector<16x8xf32>
    %176 = arith.subf %163, %175 : vector<16x8xf32>
    %177 = arith.mulf %176, %176 : vector<16x8xf32>
    %178 = vector.shape_cast %177 : vector<16x8xf32> to vector<1x16x8xf32>
    %cst_84 = arith.constant dense<0.000000e+00> : vector<1xf32>
    %179 = vector.multi_reduction <add>, %178, %cst_84 [1, 2] : vector<1x16x8xf32> to vector<1xf32>
    %180 = vector.shape_cast %179 : vector<1xf32> to vector<1x1x1xf32>
    %181 = vector.extract %180[0, 0, 0] : f32 from vector<1x1x1xf32>
    %182 = vector.broadcast %181 : f32 to vector<1x1xf32>
    %cst_85 = arith.constant 1.280000e+02 : f32
    %183 = vector.broadcast %cst_85 : f32 to vector<1x1xf32>
    %184 = arith.divf %182, %183 : vector<1x1xf32>
    %185 = vector.broadcast %174 : vector<1x1xf32> to vector<16x8xf32>
    %186 = arith.subf %163, %185 : vector<16x8xf32>
    %cst_86 = arith.constant 9.99999997E-7 : f32
    %187 = vector.broadcast %cst_86 : f32 to vector<1x1xf32>
    %188 = arith.addf %184, %187 : vector<1x1xf32>
    %189 = math.rsqrt %188 : vector<1x1xf32>
    %190 = vector.broadcast %189 : vector<1x1xf32> to vector<16x8xf32>
    %191 = arith.mulf %186, %190 : vector<16x8xf32>
    %192 = vector.broadcast %165 : vector<1x8xf32> to vector<16x8xf32>
    %193 = arith.mulf %191, %192 : vector<16x8xf32>
    %194 = vector.broadcast %167 : vector<1x8xf32> to vector<16x8xf32>
    %195 = arith.addf %193, %194 : vector<16x8xf32>
    %cst_87 = arith.constant 0.000000e+00 : f32
    %196 = vector.broadcast %cst_87 : f32 to vector<2x8xf32>
    %197 = tpu.concatenate %196, %195, %196 in 0 : vector<2x8xf32>, vector<16x8xf32>, vector<2x8xf32> -> vector<20x8xf32>
    %198 = vector.extract_strided_slice %197 {offsets = [0, 0], sizes = [16, 8], strides = [1, 1]} : vector<20x8xf32> to vector<16x8xf32>
    %199 = vector.extract_strided_slice %197 {offsets = [2, 0], sizes = [16, 8], strides = [1, 1]} : vector<20x8xf32> to vector<16x8xf32>
    %200 = vector.extract_strided_slice %197 {offsets = [4, 0], sizes = [16, 8], strides = [1, 1]} : vector<20x8xf32> to vector<16x8xf32>
    %201 = tpu.concatenate %198, %199, %200 in 1 : vector<16x8xf32>, vector<16x8xf32>, vector<16x8xf32> -> vector<16x24xf32>
    %c1_88 = arith.constant 1 : index
    %c0_89 = arith.constant 0 : index
    %c0_90 = arith.constant 0 : index
    %202 = vector.load %arg13[%c1_88, %c0_89, %c0_90] : memref<4x24x8xf32, #tpu.memory_space<vmem>>, vector<1x24x8xf32>
    %203 = vector.shape_cast %202 : vector<1x24x8xf32> to vector<24x8xf32>
    %cst_91 = arith.constant dense<0.000000e+00> : vector<16x8xf32>
    %204 = tpu.matmul %201, %203, %cst_91 {dimension_numbers = #tpu.dot_dimension_numbers<[1], [0], [0], [1], [0, 0, 1, 1], [], []>} : vector<16x24xf32>, vector<24x8xf32>, vector<16x8xf32> -> vector<16x8xf32>
    %c1_92 = arith.constant 1 : index
    %c0_93 = arith.constant 0 : index
    %c0_94 = arith.constant 0 : index
    %205 = vector.load %arg14[%c1_92, %c0_93, %c0_94] : memref<4x1x8xf32, #tpu.memory_space<vmem>>, vector<1x1x8xf32>
    %206 = vector.shape_cast %205 : vector<1x1x8xf32> to vector<1x8xf32>
    %207 = vector.broadcast %206 : vector<1x8xf32> to vector<16x8xf32>
    %208 = arith.addf %204, %207 : vector<16x8xf32>
    %cst_95 = arith.constant 0.000000e+00 : f32
    %209 = vector.broadcast %cst_95 : f32 to vector<16x8xf32>
    %210 = arith.cmpf ogt, %208, %209 : vector<16x8xf32>
    %211 = vector.broadcast %151 : f32 to vector<16x8xf32>
    %212 = arith.mulf %211, %208 : vector<16x8xf32>
    %213 = arith.select %210, %208, %212 : vector<16x8xi1>, vector<16x8xf32>
    %c1_96 = arith.constant 1 : index
    %c0_97 = arith.constant 0 : index
    %c0_98 = arith.constant 0 : index
    %214 = vector.load %arg15[%c1_96, %c0_97, %c0_98] : memref<4x1x8xf32, #tpu.memory_space<vmem>>, vector<1x1x8xf32>
    %215 = vector.shape_cast %214 : vector<1x1x8xf32> to vector<1x8xf32>
    %c1_99 = arith.constant 1 : index
    %c0_100 = arith.constant 0 : index
    %c0_101 = arith.constant 0 : index
    %216 = vector.load %arg16[%c1_99, %c0_100, %c0_101] : memref<4x1x8xf32, #tpu.memory_space<vmem>>, vector<1x1x8xf32>
    %217 = vector.shape_cast %216 : vector<1x1x8xf32> to vector<1x8xf32>
    %218 = vector.shape_cast %213 : vector<16x8xf32> to vector<1x16x8xf32>
    %cst_102 = arith.constant dense<0.000000e+00> : vector<1xf32>
    %219 = vector.multi_reduction <add>, %218, %cst_102 [1, 2] : vector<1x16x8xf32> to vector<1xf32>
    %220 = vector.shape_cast %219 : vector<1xf32> to vector<1x1x1xf32>
    %221 = vector.extract %220[0, 0, 0] : f32 from vector<1x1x1xf32>
    %222 = vector.broadcast %221 : f32 to vector<1x1xf32>
    %cst_103 = arith.constant 1.280000e+02 : f32
    %223 = vector.broadcast %cst_103 : f32 to vector<1x1xf32>
    %224 = arith.divf %222, %223 : vector<1x1xf32>
    %225 = vector.broadcast %224 : vector<1x1xf32> to vector<16x8xf32>
    %226 = arith.subf %213, %225 : vector<16x8xf32>
    %227 = arith.mulf %226, %226 : vector<16x8xf32>
    %228 = vector.shape_cast %227 : vector<16x8xf32> to vector<1x16x8xf32>
    %cst_104 = arith.constant dense<0.000000e+00> : vector<1xf32>
    %229 = vector.multi_reduction <add>, %228, %cst_104 [1, 2] : vector<1x16x8xf32> to vector<1xf32>
    %230 = vector.shape_cast %229 : vector<1xf32> to vector<1x1x1xf32>
    %231 = vector.extract %230[0, 0, 0] : f32 from vector<1x1x1xf32>
    %232 = vector.broadcast %231 : f32 to vector<1x1xf32>
    %cst_105 = arith.constant 1.280000e+02 : f32
    %233 = vector.broadcast %cst_105 : f32 to vector<1x1xf32>
    %234 = arith.divf %232, %233 : vector<1x1xf32>
    %235 = vector.broadcast %224 : vector<1x1xf32> to vector<16x8xf32>
    %236 = arith.subf %213, %235 : vector<16x8xf32>
    %cst_106 = arith.constant 9.99999997E-7 : f32
    %237 = vector.broadcast %cst_106 : f32 to vector<1x1xf32>
    %238 = arith.addf %234, %237 : vector<1x1xf32>
    %239 = math.rsqrt %238 : vector<1x1xf32>
    %240 = vector.broadcast %239 : vector<1x1xf32> to vector<16x8xf32>
    %241 = arith.mulf %236, %240 : vector<16x8xf32>
    %242 = vector.broadcast %215 : vector<1x8xf32> to vector<16x8xf32>
    %243 = arith.mulf %241, %242 : vector<16x8xf32>
    %244 = vector.broadcast %217 : vector<1x8xf32> to vector<16x8xf32>
    %245 = arith.addf %243, %244 : vector<16x8xf32>
    %c1_107 = arith.constant 1 : index
    %c0_108 = arith.constant 0 : index
    %c0_109 = arith.constant 0 : index
    %246 = vector.load %arg17[%c1_107, %c0_108, %c0_109] : memref<4x8x10xf32, #tpu.memory_space<vmem>>, vector<1x8x10xf32>
    %247 = vector.shape_cast %246 : vector<1x8x10xf32> to vector<8x10xf32>
    %cst_110 = arith.constant dense<0.000000e+00> : vector<16x10xf32>
    %248 = tpu.matmul %245, %247, %cst_110 {dimension_numbers = #tpu.dot_dimension_numbers<[1], [0], [0], [1], [0, 0, 1, 1], [], []>} : vector<16x8xf32>, vector<8x10xf32>, vector<16x10xf32> -> vector<16x10xf32>
    %c1_111 = arith.constant 1 : index
    %c0_112 = arith.constant 0 : index
    %c0_113 = arith.constant 0 : index
    %249 = vector.load %arg18[%c1_111, %c0_112, %c0_113] : memref<4x1x10xf32, #tpu.memory_space<vmem>>, vector<1x1x10xf32>
    %250 = vector.shape_cast %249 : vector<1x1x10xf32> to vector<1x10xf32>
    %251 = vector.broadcast %250 : vector<1x10xf32> to vector<16x10xf32>
    %252 = arith.addf %248, %251 : vector<16x10xf32>
    %253 = vector.extract_strided_slice %252 {offsets = [0, 0], sizes = [16, 4], strides = [1, 1]} : vector<16x10xf32> to vector<16x4xf32>
    %254 = arith.addf %147, %253 : vector<16x4xf32>
    %255 = vector.extract_strided_slice %252 {offsets = [0, 4], sizes = [16, 6], strides = [1, 1]} : vector<16x10xf32> to vector<16x6xf32>
    %256 = arith.addf %149, %255 : vector<16x6xf32>
    %c2 = arith.constant 2 : index
    %257 = memref.load %arg2[%c2] : memref<9xf32, #tpu.memory_space<smem>>
    %c6 = arith.constant 6 : index
    %258 = memref.load %arg2[%c6] : memref<9xf32, #tpu.memory_space<smem>>
    %c2_114 = arith.constant 2 : index
    %c0_115 = arith.constant 0 : index
    %c0_116 = arith.constant 0 : index
    %259 = vector.load %arg9[%c2_114, %c0_115, %c0_116] : memref<4x4x8xf32, #tpu.memory_space<vmem>>, vector<1x4x8xf32>
    %260 = vector.shape_cast %259 : vector<1x4x8xf32> to vector<4x8xf32>
    %cst_117 = arith.constant dense<0.000000e+00> : vector<16x8xf32>
    %261 = tpu.matmul %254, %260, %cst_117 {dimension_numbers = #tpu.dot_dimension_numbers<[1], [0], [0], [1], [0, 0, 1, 1], [], []>} : vector<16x4xf32>, vector<4x8xf32>, vector<16x8xf32> -> vector<16x8xf32>
    %c2_118 = arith.constant 2 : index
    %c0_119 = arith.constant 0 : index
    %c0_120 = arith.constant 0 : index
    %262 = vector.load %arg10[%c2_118, %c0_119, %c0_120] : memref<4x1x8xf32, #tpu.memory_space<vmem>>, vector<1x1x8xf32>
    %263 = vector.shape_cast %262 : vector<1x1x8xf32> to vector<1x8xf32>
    %264 = vector.broadcast %263 : vector<1x8xf32> to vector<16x8xf32>
    %265 = arith.addf %261, %264 : vector<16x8xf32>
    %cst_121 = arith.constant 0.000000e+00 : f32
    %266 = vector.broadcast %cst_121 : f32 to vector<16x8xf32>
    %267 = arith.cmpf ogt, %265, %266 : vector<16x8xf32>
    %268 = vector.broadcast %257 : f32 to vector<16x8xf32>
    %269 = arith.mulf %268, %265 : vector<16x8xf32>
    %270 = arith.select %267, %265, %269 : vector<16x8xi1>, vector<16x8xf32>
    %c2_122 = arith.constant 2 : index
    %c0_123 = arith.constant 0 : index
    %c0_124 = arith.constant 0 : index
    %271 = vector.load %arg11[%c2_122, %c0_123, %c0_124] : memref<4x1x8xf32, #tpu.memory_space<vmem>>, vector<1x1x8xf32>
    %272 = vector.shape_cast %271 : vector<1x1x8xf32> to vector<1x8xf32>
    %c2_125 = arith.constant 2 : index
    %c0_126 = arith.constant 0 : index
    %c0_127 = arith.constant 0 : index
    %273 = vector.load %arg12[%c2_125, %c0_126, %c0_127] : memref<4x1x8xf32, #tpu.memory_space<vmem>>, vector<1x1x8xf32>
    %274 = vector.shape_cast %273 : vector<1x1x8xf32> to vector<1x8xf32>
    %275 = vector.shape_cast %270 : vector<16x8xf32> to vector<1x16x8xf32>
    %cst_128 = arith.constant dense<0.000000e+00> : vector<1xf32>
    %276 = vector.multi_reduction <add>, %275, %cst_128 [1, 2] : vector<1x16x8xf32> to vector<1xf32>
    %277 = vector.shape_cast %276 : vector<1xf32> to vector<1x1x1xf32>
    %278 = vector.extract %277[0, 0, 0] : f32 from vector<1x1x1xf32>
    %279 = vector.broadcast %278 : f32 to vector<1x1xf32>
    %cst_129 = arith.constant 1.280000e+02 : f32
    %280 = vector.broadcast %cst_129 : f32 to vector<1x1xf32>
    %281 = arith.divf %279, %280 : vector<1x1xf32>
    %282 = vector.broadcast %281 : vector<1x1xf32> to vector<16x8xf32>
    %283 = arith.subf %270, %282 : vector<16x8xf32>
    %284 = arith.mulf %283, %283 : vector<16x8xf32>
    %285 = vector.shape_cast %284 : vector<16x8xf32> to vector<1x16x8xf32>
    %cst_130 = arith.constant dense<0.000000e+00> : vector<1xf32>
    %286 = vector.multi_reduction <add>, %285, %cst_130 [1, 2] : vector<1x16x8xf32> to vector<1xf32>
    %287 = vector.shape_cast %286 : vector<1xf32> to vector<1x1x1xf32>
    %288 = vector.extract %287[0, 0, 0] : f32 from vector<1x1x1xf32>
    %289 = vector.broadcast %288 : f32 to vector<1x1xf32>
    %cst_131 = arith.constant 1.280000e+02 : f32
    %290 = vector.broadcast %cst_131 : f32 to vector<1x1xf32>
    %291 = arith.divf %289, %290 : vector<1x1xf32>
    %292 = vector.broadcast %281 : vector<1x1xf32> to vector<16x8xf32>
    %293 = arith.subf %270, %292 : vector<16x8xf32>
    %cst_132 = arith.constant 9.99999997E-7 : f32
    %294 = vector.broadcast %cst_132 : f32 to vector<1x1xf32>
    %295 = arith.addf %291, %294 : vector<1x1xf32>
    %296 = math.rsqrt %295 : vector<1x1xf32>
    %297 = vector.broadcast %296 : vector<1x1xf32> to vector<16x8xf32>
    %298 = arith.mulf %293, %297 : vector<16x8xf32>
    %299 = vector.broadcast %272 : vector<1x8xf32> to vector<16x8xf32>
    %300 = arith.mulf %298, %299 : vector<16x8xf32>
    %301 = vector.broadcast %274 : vector<1x8xf32> to vector<16x8xf32>
    %302 = arith.addf %300, %301 : vector<16x8xf32>
    %cst_133 = arith.constant 0.000000e+00 : f32
    %303 = vector.broadcast %cst_133 : f32 to vector<1x8xf32>
    %304 = tpu.concatenate %303, %302, %303 in 0 : vector<1x8xf32>, vector<16x8xf32>, vector<1x8xf32> -> vector<18x8xf32>
    %305 = vector.extract_strided_slice %304 {offsets = [0, 0], sizes = [16, 8], strides = [1, 1]} : vector<18x8xf32> to vector<16x8xf32>
    %306 = vector.extract_strided_slice %304 {offsets = [1, 0], sizes = [16, 8], strides = [1, 1]} : vector<18x8xf32> to vector<16x8xf32>
    %307 = vector.extract_strided_slice %304 {offsets = [2, 0], sizes = [16, 8], strides = [1, 1]} : vector<18x8xf32> to vector<16x8xf32>
    %308 = tpu.concatenate %305, %306, %307 in 1 : vector<16x8xf32>, vector<16x8xf32>, vector<16x8xf32> -> vector<16x24xf32>
    %c2_134 = arith.constant 2 : index
    %c0_135 = arith.constant 0 : index
    %c0_136 = arith.constant 0 : index
    %309 = vector.load %arg13[%c2_134, %c0_135, %c0_136] : memref<4x24x8xf32, #tpu.memory_space<vmem>>, vector<1x24x8xf32>
    %310 = vector.shape_cast %309 : vector<1x24x8xf32> to vector<24x8xf32>
    %cst_137 = arith.constant dense<0.000000e+00> : vector<16x8xf32>
    %311 = tpu.matmul %308, %310, %cst_137 {dimension_numbers = #tpu.dot_dimension_numbers<[1], [0], [0], [1], [0, 0, 1, 1], [], []>} : vector<16x24xf32>, vector<24x8xf32>, vector<16x8xf32> -> vector<16x8xf32>
    %c2_138 = arith.constant 2 : index
    %c0_139 = arith.constant 0 : index
    %c0_140 = arith.constant 0 : index
    %312 = vector.load %arg14[%c2_138, %c0_139, %c0_140] : memref<4x1x8xf32, #tpu.memory_space<vmem>>, vector<1x1x8xf32>
    %313 = vector.shape_cast %312 : vector<1x1x8xf32> to vector<1x8xf32>
    %314 = vector.broadcast %313 : vector<1x8xf32> to vector<16x8xf32>
    %315 = arith.addf %311, %314 : vector<16x8xf32>
    %cst_141 = arith.constant 0.000000e+00 : f32
    %316 = vector.broadcast %cst_141 : f32 to vector<16x8xf32>
    %317 = arith.cmpf ogt, %315, %316 : vector<16x8xf32>
    %318 = vector.broadcast %258 : f32 to vector<16x8xf32>
    %319 = arith.mulf %318, %315 : vector<16x8xf32>
    %320 = arith.select %317, %315, %319 : vector<16x8xi1>, vector<16x8xf32>
    %c2_142 = arith.constant 2 : index
    %c0_143 = arith.constant 0 : index
    %c0_144 = arith.constant 0 : index
    %321 = vector.load %arg15[%c2_142, %c0_143, %c0_144] : memref<4x1x8xf32, #tpu.memory_space<vmem>>, vector<1x1x8xf32>
    %322 = vector.shape_cast %321 : vector<1x1x8xf32> to vector<1x8xf32>
    %c2_145 = arith.constant 2 : index
    %c0_146 = arith.constant 0 : index
    %c0_147 = arith.constant 0 : index
    %323 = vector.load %arg16[%c2_145, %c0_146, %c0_147] : memref<4x1x8xf32, #tpu.memory_space<vmem>>, vector<1x1x8xf32>
    %324 = vector.shape_cast %323 : vector<1x1x8xf32> to vector<1x8xf32>
    %325 = vector.shape_cast %320 : vector<16x8xf32> to vector<1x16x8xf32>
    %cst_148 = arith.constant dense<0.000000e+00> : vector<1xf32>
    %326 = vector.multi_reduction <add>, %325, %cst_148 [1, 2] : vector<1x16x8xf32> to vector<1xf32>
    %327 = vector.shape_cast %326 : vector<1xf32> to vector<1x1x1xf32>
    %328 = vector.extract %327[0, 0, 0] : f32 from vector<1x1x1xf32>
    %329 = vector.broadcast %328 : f32 to vector<1x1xf32>
    %cst_149 = arith.constant 1.280000e+02 : f32
    %330 = vector.broadcast %cst_149 : f32 to vector<1x1xf32>
    %331 = arith.divf %329, %330 : vector<1x1xf32>
    %332 = vector.broadcast %331 : vector<1x1xf32> to vector<16x8xf32>
    %333 = arith.subf %320, %332 : vector<16x8xf32>
    %334 = arith.mulf %333, %333 : vector<16x8xf32>
    %335 = vector.shape_cast %334 : vector<16x8xf32> to vector<1x16x8xf32>
    %cst_150 = arith.constant dense<0.000000e+00> : vector<1xf32>
    %336 = vector.multi_reduction <add>, %335, %cst_150 [1, 2] : vector<1x16x8xf32> to vector<1xf32>
    %337 = vector.shape_cast %336 : vector<1xf32> to vector<1x1x1xf32>
    %338 = vector.extract %337[0, 0, 0] : f32 from vector<1x1x1xf32>
    %339 = vector.broadcast %338 : f32 to vector<1x1xf32>
    %cst_151 = arith.constant 1.280000e+02 : f32
    %340 = vector.broadcast %cst_151 : f32 to vector<1x1xf32>
    %341 = arith.divf %339, %340 : vector<1x1xf32>
    %342 = vector.broadcast %331 : vector<1x1xf32> to vector<16x8xf32>
    %343 = arith.subf %320, %342 : vector<16x8xf32>
    %cst_152 = arith.constant 9.99999997E-7 : f32
    %344 = vector.broadcast %cst_152 : f32 to vector<1x1xf32>
    %345 = arith.addf %341, %344 : vector<1x1xf32>
    %346 = math.rsqrt %345 : vector<1x1xf32>
    %347 = vector.broadcast %346 : vector<1x1xf32> to vector<16x8xf32>
    %348 = arith.mulf %343, %347 : vector<16x8xf32>
    %349 = vector.broadcast %322 : vector<1x8xf32> to vector<16x8xf32>
    %350 = arith.mulf %348, %349 : vector<16x8xf32>
    %351 = vector.broadcast %324 : vector<1x8xf32> to vector<16x8xf32>
    %352 = arith.addf %350, %351 : vector<16x8xf32>
    %c2_153 = arith.constant 2 : index
    %c0_154 = arith.constant 0 : index
    %c0_155 = arith.constant 0 : index
    %353 = vector.load %arg17[%c2_153, %c0_154, %c0_155] : memref<4x8x10xf32, #tpu.memory_space<vmem>>, vector<1x8x10xf32>
    %354 = vector.shape_cast %353 : vector<1x8x10xf32> to vector<8x10xf32>
    %cst_156 = arith.constant dense<0.000000e+00> : vector<16x10xf32>
    %355 = tpu.matmul %352, %354, %cst_156 {dimension_numbers = #tpu.dot_dimension_numbers<[1], [0], [0], [1], [0, 0, 1, 1], [], []>} : vector<16x8xf32>, vector<8x10xf32>, vector<16x10xf32> -> vector<16x10xf32>
    %c2_157 = arith.constant 2 : index
    %c0_158 = arith.constant 0 : index
    %c0_159 = arith.constant 0 : index
    %356 = vector.load %arg18[%c2_157, %c0_158, %c0_159] : memref<4x1x10xf32, #tpu.memory_space<vmem>>, vector<1x1x10xf32>
    %357 = vector.shape_cast %356 : vector<1x1x10xf32> to vector<1x10xf32>
    %358 = vector.broadcast %357 : vector<1x10xf32> to vector<16x10xf32>
    %359 = arith.addf %355, %358 : vector<16x10xf32>
    %360 = vector.extract_strided_slice %359 {offsets = [0, 0], sizes = [16, 4], strides = [1, 1]} : vector<16x10xf32> to vector<16x4xf32>
    %361 = arith.addf %254, %360 : vector<16x4xf32>
    %362 = vector.extract_strided_slice %359 {offsets = [0, 4], sizes = [16, 6], strides = [1, 1]} : vector<16x10xf32> to vector<16x6xf32>
    %363 = arith.addf %256, %362 : vector<16x6xf32>
    %c3 = arith.constant 3 : index
    %364 = memref.load %arg2[%c3] : memref<9xf32, #tpu.memory_space<smem>>
    %c7 = arith.constant 7 : index
    %365 = memref.load %arg2[%c7] : memref<9xf32, #tpu.memory_space<smem>>
    %c3_160 = arith.constant 3 : index
    %c0_161 = arith.constant 0 : index
    %c0_162 = arith.constant 0 : index
    %366 = vector.load %arg9[%c3_160, %c0_161, %c0_162] : memref<4x4x8xf32, #tpu.memory_space<vmem>>, vector<1x4x8xf32>
    %367 = vector.shape_cast %366 : vector<1x4x8xf32> to vector<4x8xf32>
    %cst_163 = arith.constant dense<0.000000e+00> : vector<16x8xf32>
    %368 = tpu.matmul %361, %367, %cst_163 {dimension_numbers = #tpu.dot_dimension_numbers<[1], [0], [0], [1], [0, 0, 1, 1], [], []>} : vector<16x4xf32>, vector<4x8xf32>, vector<16x8xf32> -> vector<16x8xf32>
    %c3_164 = arith.constant 3 : index
    %c0_165 = arith.constant 0 : index
    %c0_166 = arith.constant 0 : index
    %369 = vector.load %arg10[%c3_164, %c0_165, %c0_166] : memref<4x1x8xf32, #tpu.memory_space<vmem>>, vector<1x1x8xf32>
    %370 = vector.shape_cast %369 : vector<1x1x8xf32> to vector<1x8xf32>
    %371 = vector.broadcast %370 : vector<1x8xf32> to vector<16x8xf32>
    %372 = arith.addf %368, %371 : vector<16x8xf32>
    %cst_167 = arith.constant 0.000000e+00 : f32
    %373 = vector.broadcast %cst_167 : f32 to vector<16x8xf32>
    %374 = arith.cmpf ogt, %372, %373 : vector<16x8xf32>
    %375 = vector.broadcast %364 : f32 to vector<16x8xf32>
    %376 = arith.mulf %375, %372 : vector<16x8xf32>
    %377 = arith.select %374, %372, %376 : vector<16x8xi1>, vector<16x8xf32>
    %c3_168 = arith.constant 3 : index
    %c0_169 = arith.constant 0 : index
    %c0_170 = arith.constant 0 : index
    %378 = vector.load %arg11[%c3_168, %c0_169, %c0_170] : memref<4x1x8xf32, #tpu.memory_space<vmem>>, vector<1x1x8xf32>
    %379 = vector.shape_cast %378 : vector<1x1x8xf32> to vector<1x8xf32>
    %c3_171 = arith.constant 3 : index
    %c0_172 = arith.constant 0 : index
    %c0_173 = arith.constant 0 : index
    %380 = vector.load %arg12[%c3_171, %c0_172, %c0_173] : memref<4x1x8xf32, #tpu.memory_space<vmem>>, vector<1x1x8xf32>
    %381 = vector.shape_cast %380 : vector<1x1x8xf32> to vector<1x8xf32>
    %382 = vector.shape_cast %377 : vector<16x8xf32> to vector<1x16x8xf32>
    %cst_174 = arith.constant dense<0.000000e+00> : vector<1xf32>
    %383 = vector.multi_reduction <add>, %382, %cst_174 [1, 2] : vector<1x16x8xf32> to vector<1xf32>
    %384 = vector.shape_cast %383 : vector<1xf32> to vector<1x1x1xf32>
    %385 = vector.extract %384[0, 0, 0] : f32 from vector<1x1x1xf32>
    %386 = vector.broadcast %385 : f32 to vector<1x1xf32>
    %cst_175 = arith.constant 1.280000e+02 : f32
    %387 = vector.broadcast %cst_175 : f32 to vector<1x1xf32>
    %388 = arith.divf %386, %387 : vector<1x1xf32>
    %389 = vector.broadcast %388 : vector<1x1xf32> to vector<16x8xf32>
    %390 = arith.subf %377, %389 : vector<16x8xf32>
    %391 = arith.mulf %390, %390 : vector<16x8xf32>
    %392 = vector.shape_cast %391 : vector<16x8xf32> to vector<1x16x8xf32>
    %cst_176 = arith.constant dense<0.000000e+00> : vector<1xf32>
    %393 = vector.multi_reduction <add>, %392, %cst_176 [1, 2] : vector<1x16x8xf32> to vector<1xf32>
    %394 = vector.shape_cast %393 : vector<1xf32> to vector<1x1x1xf32>
    %395 = vector.extract %394[0, 0, 0] : f32 from vector<1x1x1xf32>
    %396 = vector.broadcast %395 : f32 to vector<1x1xf32>
    %cst_177 = arith.constant 1.280000e+02 : f32
    %397 = vector.broadcast %cst_177 : f32 to vector<1x1xf32>
    %398 = arith.divf %396, %397 : vector<1x1xf32>
    %399 = vector.broadcast %388 : vector<1x1xf32> to vector<16x8xf32>
    %400 = arith.subf %377, %399 : vector<16x8xf32>
    %cst_178 = arith.constant 9.99999997E-7 : f32
    %401 = vector.broadcast %cst_178 : f32 to vector<1x1xf32>
    %402 = arith.addf %398, %401 : vector<1x1xf32>
    %403 = math.rsqrt %402 : vector<1x1xf32>
    %404 = vector.broadcast %403 : vector<1x1xf32> to vector<16x8xf32>
    %405 = arith.mulf %400, %404 : vector<16x8xf32>
    %406 = vector.broadcast %379 : vector<1x8xf32> to vector<16x8xf32>
    %407 = arith.mulf %405, %406 : vector<16x8xf32>
    %408 = vector.broadcast %381 : vector<1x8xf32> to vector<16x8xf32>
    %409 = arith.addf %407, %408 : vector<16x8xf32>
    %cst_179 = arith.constant 0.000000e+00 : f32
    %410 = vector.broadcast %cst_179 : f32 to vector<2x8xf32>
    %411 = tpu.concatenate %410, %409, %410 in 0 : vector<2x8xf32>, vector<16x8xf32>, vector<2x8xf32> -> vector<20x8xf32>
    %412 = vector.extract_strided_slice %411 {offsets = [0, 0], sizes = [16, 8], strides = [1, 1]} : vector<20x8xf32> to vector<16x8xf32>
    %413 = vector.extract_strided_slice %411 {offsets = [2, 0], sizes = [16, 8], strides = [1, 1]} : vector<20x8xf32> to vector<16x8xf32>
    %414 = vector.extract_strided_slice %411 {offsets = [4, 0], sizes = [16, 8], strides = [1, 1]} : vector<20x8xf32> to vector<16x8xf32>
    %415 = tpu.concatenate %412, %413, %414 in 1 : vector<16x8xf32>, vector<16x8xf32>, vector<16x8xf32> -> vector<16x24xf32>
    %c3_180 = arith.constant 3 : index
    %c0_181 = arith.constant 0 : index
    %c0_182 = arith.constant 0 : index
    %416 = vector.load %arg13[%c3_180, %c0_181, %c0_182] : memref<4x24x8xf32, #tpu.memory_space<vmem>>, vector<1x24x8xf32>
    %417 = vector.shape_cast %416 : vector<1x24x8xf32> to vector<24x8xf32>
    %cst_183 = arith.constant dense<0.000000e+00> : vector<16x8xf32>
    %418 = tpu.matmul %415, %417, %cst_183 {dimension_numbers = #tpu.dot_dimension_numbers<[1], [0], [0], [1], [0, 0, 1, 1], [], []>} : vector<16x24xf32>, vector<24x8xf32>, vector<16x8xf32> -> vector<16x8xf32>
    %c3_184 = arith.constant 3 : index
    %c0_185 = arith.constant 0 : index
    %c0_186 = arith.constant 0 : index
    %419 = vector.load %arg14[%c3_184, %c0_185, %c0_186] : memref<4x1x8xf32, #tpu.memory_space<vmem>>, vector<1x1x8xf32>
    %420 = vector.shape_cast %419 : vector<1x1x8xf32> to vector<1x8xf32>
    %421 = vector.broadcast %420 : vector<1x8xf32> to vector<16x8xf32>
    %422 = arith.addf %418, %421 : vector<16x8xf32>
    %cst_187 = arith.constant 0.000000e+00 : f32
    %423 = vector.broadcast %cst_187 : f32 to vector<16x8xf32>
    %424 = arith.cmpf ogt, %422, %423 : vector<16x8xf32>
    %425 = vector.broadcast %365 : f32 to vector<16x8xf32>
    %426 = arith.mulf %425, %422 : vector<16x8xf32>
    %427 = arith.select %424, %422, %426 : vector<16x8xi1>, vector<16x8xf32>
    %c3_188 = arith.constant 3 : index
    %c0_189 = arith.constant 0 : index
    %c0_190 = arith.constant 0 : index
    %428 = vector.load %arg15[%c3_188, %c0_189, %c0_190] : memref<4x1x8xf32, #tpu.memory_space<vmem>>, vector<1x1x8xf32>
    %429 = vector.shape_cast %428 : vector<1x1x8xf32> to vector<1x8xf32>
    %c3_191 = arith.constant 3 : index
    %c0_192 = arith.constant 0 : index
    %c0_193 = arith.constant 0 : index
    %430 = vector.load %arg16[%c3_191, %c0_192, %c0_193] : memref<4x1x8xf32, #tpu.memory_space<vmem>>, vector<1x1x8xf32>
    %431 = vector.shape_cast %430 : vector<1x1x8xf32> to vector<1x8xf32>
    %432 = vector.shape_cast %427 : vector<16x8xf32> to vector<1x16x8xf32>
    %cst_194 = arith.constant dense<0.000000e+00> : vector<1xf32>
    %433 = vector.multi_reduction <add>, %432, %cst_194 [1, 2] : vector<1x16x8xf32> to vector<1xf32>
    %434 = vector.shape_cast %433 : vector<1xf32> to vector<1x1x1xf32>
    %435 = vector.extract %434[0, 0, 0] : f32 from vector<1x1x1xf32>
    %436 = vector.broadcast %435 : f32 to vector<1x1xf32>
    %cst_195 = arith.constant 1.280000e+02 : f32
    %437 = vector.broadcast %cst_195 : f32 to vector<1x1xf32>
    %438 = arith.divf %436, %437 : vector<1x1xf32>
    %439 = vector.broadcast %438 : vector<1x1xf32> to vector<16x8xf32>
    %440 = arith.subf %427, %439 : vector<16x8xf32>
    %441 = arith.mulf %440, %440 : vector<16x8xf32>
    %442 = vector.shape_cast %441 : vector<16x8xf32> to vector<1x16x8xf32>
    %cst_196 = arith.constant dense<0.000000e+00> : vector<1xf32>
    %443 = vector.multi_reduction <add>, %442, %cst_196 [1, 2] : vector<1x16x8xf32> to vector<1xf32>
    %444 = vector.shape_cast %443 : vector<1xf32> to vector<1x1x1xf32>
    %445 = vector.extract %444[0, 0, 0] : f32 from vector<1x1x1xf32>
    %446 = vector.broadcast %445 : f32 to vector<1x1xf32>
    %cst_197 = arith.constant 1.280000e+02 : f32
    %447 = vector.broadcast %cst_197 : f32 to vector<1x1xf32>
    %448 = arith.divf %446, %447 : vector<1x1xf32>
    %449 = vector.broadcast %438 : vector<1x1xf32> to vector<16x8xf32>
    %450 = arith.subf %427, %449 : vector<16x8xf32>
    %cst_198 = arith.constant 9.99999997E-7 : f32
    %451 = vector.broadcast %cst_198 : f32 to vector<1x1xf32>
    %452 = arith.addf %448, %451 : vector<1x1xf32>
    %453 = math.rsqrt %452 : vector<1x1xf32>
    %454 = vector.broadcast %453 : vector<1x1xf32> to vector<16x8xf32>
    %455 = arith.mulf %450, %454 : vector<16x8xf32>
    %456 = vector.broadcast %429 : vector<1x8xf32> to vector<16x8xf32>
    %457 = arith.mulf %455, %456 : vector<16x8xf32>
    %458 = vector.broadcast %431 : vector<1x8xf32> to vector<16x8xf32>
    %459 = arith.addf %457, %458 : vector<16x8xf32>
    %c3_199 = arith.constant 3 : index
    %c0_200 = arith.constant 0 : index
    %c0_201 = arith.constant 0 : index
    %460 = vector.load %arg17[%c3_199, %c0_200, %c0_201] : memref<4x8x10xf32, #tpu.memory_space<vmem>>, vector<1x8x10xf32>
    %461 = vector.shape_cast %460 : vector<1x8x10xf32> to vector<8x10xf32>
    %cst_202 = arith.constant dense<0.000000e+00> : vector<16x10xf32>
    %462 = tpu.matmul %459, %461, %cst_202 {dimension_numbers = #tpu.dot_dimension_numbers<[1], [0], [0], [1], [0, 0, 1, 1], [], []>} : vector<16x8xf32>, vector<8x10xf32>, vector<16x10xf32> -> vector<16x10xf32>
    %c3_203 = arith.constant 3 : index
    %c0_204 = arith.constant 0 : index
    %c0_205 = arith.constant 0 : index
    %463 = vector.load %arg18[%c3_203, %c0_204, %c0_205] : memref<4x1x10xf32, #tpu.memory_space<vmem>>, vector<1x1x10xf32>
    %464 = vector.shape_cast %463 : vector<1x1x10xf32> to vector<1x10xf32>
    %465 = vector.broadcast %464 : vector<1x10xf32> to vector<16x10xf32>
    %466 = arith.addf %462, %465 : vector<16x10xf32>
    %467 = vector.extract_strided_slice %466 {offsets = [0, 4], sizes = [16, 6], strides = [1, 1]} : vector<16x10xf32> to vector<16x6xf32>
    %468 = arith.addf %363, %467 : vector<16x6xf32>
    %c8 = arith.constant 8 : index
    %469 = memref.load %arg2[%c8] : memref<9xf32, #tpu.memory_space<smem>>
    %cst_206 = arith.constant 0.000000e+00 : f32
    %470 = vector.broadcast %cst_206 : f32 to vector<16x6xf32>
    %471 = arith.cmpf ogt, %468, %470 : vector<16x6xf32>
    %472 = vector.broadcast %469 : f32 to vector<16x6xf32>
    %473 = arith.mulf %472, %468 : vector<16x6xf32>
    %474 = arith.select %471, %468, %473 : vector<16x6xi1>, vector<16x6xf32>
    %c0_207 = arith.constant 0 : index
    %c0_208 = arith.constant 0 : index
    %475 = vector.load %arg19[%c0_207, %c0_208] : memref<6x16xf32, #tpu.memory_space<vmem>>, vector<6x16xf32>
    %cst_209 = arith.constant dense<0.000000e+00> : vector<16x16xf32>
    %476 = tpu.matmul %474, %475, %cst_209 {dimension_numbers = #tpu.dot_dimension_numbers<[1], [0], [0], [1], [0, 0, 1, 1], [], []>} : vector<16x6xf32>, vector<6x16xf32>, vector<16x16xf32> -> vector<16x16xf32>
    %c0_210 = arith.constant 0 : index
    %c0_211 = arith.constant 0 : index
    %477 = vector.load %arg20[%c0_210, %c0_211] : memref<1x16xf32, #tpu.memory_space<vmem>>, vector<1x16xf32>
    %478 = vector.broadcast %477 : vector<1x16xf32> to vector<16x16xf32>
    %479 = arith.addf %476, %478 : vector<16x16xf32>
    %cst_212 = arith.constant 0.000000e+00 : f32
    %480 = vector.broadcast %cst_212 : f32 to vector<16x16xf32>
    %481 = arith.subf %480, %479 : vector<16x16xf32>
    %482 = math.exp %481 : vector<16x16xf32>
    %cst_213 = arith.constant 1.000000e+00 : f32
    %483 = vector.broadcast %cst_213 : f32 to vector<16x16xf32>
    %484 = arith.addf %483, %482 : vector<16x16xf32>
    %cst_214 = arith.constant 1.000000e+00 : f32
    %485 = vector.broadcast %cst_214 : f32 to vector<16x16xf32>
    %486 = arith.divf %485, %484 : vector<16x16xf32>
    %487 = vector.extract_strided_slice %486 {offsets = [0, 0], sizes = [16, 8], strides = [1, 1]} : vector<16x16xf32> to vector<16x8xf32>
    %488 = arith.mulf %6, %487 : vector<16x8xf32>
    %c0_215 = arith.constant 0 : index
    %c0_216 = arith.constant 0 : index
    %489 = vector.load %arg21[%c0_215, %c0_216] : memref<8x16xf32, #tpu.memory_space<vmem>>, vector<8x16xf32>
    %cst_217 = arith.constant dense<0.000000e+00> : vector<16x16xf32>
    %490 = tpu.matmul %488, %489, %cst_217 {dimension_numbers = #tpu.dot_dimension_numbers<[1], [0], [0], [1], [0, 0, 1, 1], [], []>} : vector<16x8xf32>, vector<8x16xf32>, vector<16x16xf32> -> vector<16x16xf32>
    %491 = vector.extract_strided_slice %486 {offsets = [0, 8], sizes = [16, 8], strides = [1, 1]} : vector<16x16xf32> to vector<16x8xf32>
    %492 = arith.mulf %6, %491 : vector<16x8xf32>
    %c0_218 = arith.constant 0 : index
    %c0_219 = arith.constant 0 : index
    %493 = vector.load %arg21[%c0_218, %c0_219] : memref<8x16xf32, #tpu.memory_space<vmem>>, vector<8x16xf32>
    %cst_220 = arith.constant dense<0.000000e+00> : vector<16x16xf32>
    %494 = tpu.matmul %492, %493, %cst_220 {dimension_numbers = #tpu.dot_dimension_numbers<[1], [0], [0], [1], [0, 0, 1, 1], [], []>} : vector<16x8xf32>, vector<8x16xf32>, vector<16x16xf32> -> vector<16x16xf32>
    %495 = tpu.concatenate %490, %494 in 1 : vector<16x16xf32>, vector<16x16xf32> -> vector<16x32xf32>
    %c0_221 = arith.constant 0 : index
    %c0_222 = arith.constant 0 : index
    %c0_223 = arith.constant 0 : index
    %496 = vector.load %arg22[%c0_221, %c0_222, %c0_223] : memref<1x16x32xf32, #tpu.memory_space<vmem>>, vector<1x16x32xf32>
    %497 = vector.shape_cast %496 : vector<1x16x32xf32> to vector<16x32xf32>
    %498 = vector.shape_cast %495 : vector<16x32xf32> to vector<1x16x32xf32>
    tpu.vector_store %arg22[%c0_221, %c0_222, %c0_223], %498 {strides = array<i32>} : memref<1x16x32xf32, #tpu.memory_space<vmem>>, vector<1x16x32xf32>,
    return
  }
  func.func @transform_0(%arg0: i32) -> (i32, i32, i32) {
    %c0_i32 = arith.constant 0 : i32
    %c0_i32_0 = arith.constant 0 : i32
    %c0_i32_1 = arith.constant 0 : i32
    return %arg0, %c0_i32, %c0_i32_0 : i32, i32, i32
  }
  func.func @transform_1(%arg0: i32) -> i32 {
    %c0_i32 = arith.constant 0 : i32
    %c0_i32_0 = arith.constant 0 : i32
    return %c0_i32 : i32
  }
  func.func @transform_2(%arg0: i32) -> (i32, i32) {
    %c0_i32 = arith.constant 0 : i32
    %c0_i32_0 = arith.constant 0 : i32
    %c0_i32_1 = arith.constant 0 : i32
    return %c0_i32, %c0_i32_0 : i32, i32
  }
  func.func @transform_3(%arg0: i32) -> (i32, i32) {
    %c0_i32 = arith.constant 0 : i32
    %c0_i32_0 = arith.constant 0 : i32
    %c0_i32_1 = arith.constant 0 : i32
    return %c0_i32, %c0_i32_0 : i32, i32
  }
  func.func @transform_4(%arg0: i32) -> (i32, i32) {
    %c0_i32 = arith.constant 0 : i32
    %c0_i32_0 = arith.constant 0 : i32
    %c0_i32_1 = arith.constant 0 : i32
    return %c0_i32, %c0_i32_0 : i32, i32
  }
  func.func @transform_5(%arg0: i32) -> (i32, i32) {
    %c0_i32 = arith.constant 0 : i32
    %c0_i32_0 = arith.constant 0 : i32
    %c0_i32_1 = arith.constant 0 : i32
    return %c0_i32, %c0_i32_0 : i32, i32
  }
  func.func @transform_6(%arg0: i32) -> (i32, i32) {
    %c0_i32 = arith.constant 0 : i32
    %c0_i32_0 = arith.constant 0 : i32
    %c0_i32_1 = arith.constant 0 : i32
    return %c0_i32, %c0_i32_0 : i32, i32
  }
  func.func @transform_7(%arg0: i32) -> (i32, i32) {
    %c0_i32 = arith.constant 0 : i32
    %c0_i32_0 = arith.constant 0 : i32
    %c0_i32_1 = arith.constant 0 : i32
    return %c0_i32, %c0_i32_0 : i32, i32
  }
  func.func @transform_8(%arg0: i32) -> (i32, i32, i32) {
    %c0_i32 = arith.constant 0 : i32
    %c0_i32_0 = arith.constant 0 : i32
    %c0_i32_1 = arith.constant 0 : i32
    %c0_i32_2 = arith.constant 0 : i32
    return %c0_i32, %c0_i32_0, %c0_i32_1 : i32, i32, i32
  }
  func.func @transform_9(%arg0: i32) -> (i32, i32, i32) {
    %c0_i32 = arith.constant 0 : i32
    %c0_i32_0 = arith.constant 0 : i32
    %c0_i32_1 = arith.constant 0 : i32
    %c0_i32_2 = arith.constant 0 : i32
    return %c0_i32, %c0_i32_0, %c0_i32_1 : i32, i32, i32
  }
  func.func @transform_10(%arg0: i32) -> (i32, i32, i32) {
    %c0_i32 = arith.constant 0 : i32
    %c0_i32_0 = arith.constant 0 : i32
    %c0_i32_1 = arith.constant 0 : i32
    %c0_i32_2 = arith.constant 0 : i32
    return %c0_i32, %c0_i32_0, %c0_i32_1 : i32, i32, i32
  }
  func.func @transform_11(%arg0: i32) -> (i32, i32, i32) {
    %c0_i32 = arith.constant 0 : i32
    %c0_i32_0 = arith.constant 0 : i32
    %c0_i32_1 = arith.constant 0 : i32
    %c0_i32_2 = arith.constant 0 : i32
    return %c0_i32, %c0_i32_0, %c0_i32_1 : i32, i32, i32
  }
  func.func @transform_12(%arg0: i32) -> (i32, i32, i32) {
    %c0_i32 = arith.constant 0 : i32
    %c0_i32_0 = arith.constant 0 : i32
    %c0_i32_1 = arith.constant 0 : i32
    %c0_i32_2 = arith.constant 0 : i32
    return %c0_i32, %c0_i32_0, %c0_i32_1 : i32, i32, i32
  }
  func.func @transform_13(%arg0: i32) -> (i32, i32, i32) {
    %c0_i32 = arith.constant 0 : i32
    %c0_i32_0 = arith.constant 0 : i32
    %c0_i32_1 = arith.constant 0 : i32
    %c0_i32_2 = arith.constant 0 : i32
    return %c0_i32, %c0_i32_0, %c0_i32_1 : i32, i32, i32
  }
  func.func @transform_14(%arg0: i32) -> (i32, i32, i32) {
    %c0_i32 = arith.constant 0 : i32
    %c0_i32_0 = arith.constant 0 : i32
    %c0_i32_1 = arith.constant 0 : i32
    %c0_i32_2 = arith.constant 0 : i32
    return %c0_i32, %c0_i32_0, %c0_i32_1 : i32, i32, i32
  }
  func.func @transform_15(%arg0: i32) -> (i32, i32, i32) {
    %c0_i32 = arith.constant 0 : i32
    %c0_i32_0 = arith.constant 0 : i32
    %c0_i32_1 = arith.constant 0 : i32
    %c0_i32_2 = arith.constant 0 : i32
    return %c0_i32, %c0_i32_0, %c0_i32_1 : i32, i32, i32
  }
  func.func @transform_16(%arg0: i32) -> (i32, i32, i32) {
    %c0_i32 = arith.constant 0 : i32
    %c0_i32_0 = arith.constant 0 : i32
    %c0_i32_1 = arith.constant 0 : i32
    %c0_i32_2 = arith.constant 0 : i32
    return %c0_i32, %c0_i32_0, %c0_i32_1 : i32, i32, i32
  }
  func.func @transform_17(%arg0: i32) -> (i32, i32, i32) {
    %c0_i32 = arith.constant 0 : i32
    %c0_i32_0 = arith.constant 0 : i32
    %c0_i32_1 = arith.constant 0 : i32
    %c0_i32_2 = arith.constant 0 : i32
    return %c0_i32, %c0_i32_0, %c0_i32_1 : i32, i32, i32
  }
  func.func @transform_18(%arg0: i32) -> (i32, i32) {
    %c0_i32 = arith.constant 0 : i32
    %c0_i32_0 = arith.constant 0 : i32
    %c0_i32_1 = arith.constant 0 : i32
    return %c0_i32, %c0_i32_0 : i32, i32
  }
  func.func @transform_19(%arg0: i32) -> (i32, i32) {
    %c0_i32 = arith.constant 0 : i32
    %c0_i32_0 = arith.constant 0 : i32
    %c0_i32_1 = arith.constant 0 : i32
    return %c0_i32, %c0_i32_0 : i32, i32
  }
  func.func @transform_20(%arg0: i32) -> (i32, i32) {
    %c0_i32 = arith.constant 0 : i32
    %c0_i32_0 = arith.constant 0 : i32
    %c0_i32_1 = arith.constant 0 : i32
    return %c0_i32, %c0_i32_0 : i32, i32
  }
  func.func @transform_21(%arg0: i32) -> (i32, i32, i32) {
    %c0_i32 = arith.constant 0 : i32
    %c0_i32_0 = arith.constant 0 : i32
    %c0_i32_1 = arith.constant 0 : i32
    return %arg0, %c0_i32, %c0_i32_0 : i32, i32, i32
  }
}

</mosaic_0001>

<bundles_post_ra>
// kernel: _lambda_.1
= control target key start
LH: loop header
LB: loop body
LE: loop exit
PB: predicated region body
PF: predicated region fallthrough
CT: control target
= control target key end

     0   :  { %s4009_s0 = inlined_call_operand.vmem [shape: f32[2,16,16], index: 0, kind: input, shape index: {}]   ;;  %s4010_s1 = inlined_call_operand.vmem [shape: f32[9], index: 1, kind: input, shape index: {}]   ;;  %s4011_s2 = inlined_call_operand.vmem [shape: f32[16,8], index: 2, kind: input, shape index: {}]   ;;  %s4012_s3 = inlined_call_operand.vmem [shape: f32[1,8], index: 3, kind: input, shape index: {}]   ;;  %s4013_s4 = inlined_call_operand.vmem [shape: f32[1,8], index: 4, kind: input, shape index: {}]   ;;  %s4014_s5 = inlined_call_operand.vmem [shape: f32[1,8], index: 5, kind: input, shape index: {}]   ;;  %s4015_s6 = inlined_call_operand.vmem [shape: f32[8,4], index: 6, kind: input, shape index: {}]   ;;  %s4016_s7 = inlined_call_operand.vmem [shape: f32[1,4], index: 7, kind: input, shape index: {}]   ;;  %s4017_s8 = inlined_call_operand.vmem [shape: f32[4,4,8], index: 8, kind: input, shape index: {}]   ;;  %s4018_s9 = inlined_call_operand.vmem [shape: f32[4,1,8], index: 9, kind: input, shape index: {}]   ;;  %s4019_s10 = inlined_call_operand.vmem [shape: f32[4,1,8], index: 10, kind: input, shape index: {}]   ;;  %s4020_s11 = inlined_call_operand.vmem [shape: f32[4,1,8], index: 11, kind: input, shape index: {}]   ;;  %s4021_s12 = inlined_call_operand.vmem [shape: f32[4,24,8], index: 12, kind: input, shape index: {}]   ;;  %s4022_s13 = inlined_call_operand.vmem [shape: f32[4,1,8], index: 13, kind: input, shape index: {}]   ;;  %s4023_s14 = inlined_call_operand.vmem [shape: f32[4,1,8], index: 14, kind: input, shape index: {}]   ;;  %s4024_s15 = inlined_call_operand.vmem [shape: f32[4,1,8], index: 15, kind: input, shape index: {}]   ;;  %s4025_s16 = inlined_call_operand.vmem [shape: f32[4,8,10], index: 16, kind: input, shape index: {}]   ;;  %s4026_s17 = inlined_call_operand.vmem [shape: f32[4,1,10], index: 17, kind: input, shape index: {}]   ;;  %s4027_s18 = inlined_call_operand.vmem [shape: f32[6,16], index: 18, kind: input, shape index: {}]   ;;  %s4028_s19 = inlined_call_operand.vmem [shape: f32[1,16], index: 19, kind: input, shape index: {}]   ;;  %s4029_s20 = inlined_call_operand.vmem [shape: f32[8,16], index: 20, kind: input, shape index: {}]   ;;  %s4030_s21 = inlined_call_operand.vmem [shape: f32[2,16,32], index: 21, kind: output, shape index: {}]  }
   0x1   :  { %4032 = sst [smem:[#allocation5_spill]] %s4009_s0 }
   0x2   :  { %4033 = sst [smem:[#allocation6_spill]] %s4010_s1 }
   0x3   :  { %4034 = sst [smem:[#allocation7_spill]] %s4011_s2 }
   0x4   :  { %4035 = sst [smem:[#allocation8_spill]] %s4012_s3 }
   0x5   :  { %4036 = sst [smem:[#allocation9_spill]] %s4013_s4 }
   0x6   :  { %4037 = sst [smem:[#allocation10_spill]] %s4014_s5 }
   0x7   :  { %26 = vsyncpa [#allocation3], 0  ;;  %s3589_s2 = smov 0  }
   0x8 LB: > { %s3595_s25 = sadd.s32 4294967295, %s3472_s2   ;;  %p3070_p0 = scmp.ge.s32.totalorder %s3472_s2, 1  ;;  %s3472_s2 = sphi %s3589_s2, %s32_s2  }
   0x9   : > { %p509_p1 = scmp.lt.s32.totalorder %s3472_s2, 3  ;;  %s4038_s3 = sld [smem:[#allocation6_spill]] }
   0xa   : > { %p3406_p3 = scmp.eq.s32.totalorder %s3595_s25, 0 }
   0xb   : > { %p3602_p2 = pnand %p3070_p0, %p509_p1 }
   0xd   : > { %p3402_p4 = pneg %p3602_p2 }
   0xf   : > { %s522_s28 = sshll.u32 %s4038_s3, 4  ;;  %p3403_p5 = pnand %p3406_p3, %p3402_p4  ;;  %s523_s28 = int_to_ptr.vmem [resolvable:$true] %s522_s28 }
  0x10   : > { %s3447_s0 = scalar_lea.vmem %s523_s28, 16  ;;  %p3455_p10 = scmp.lt.s32.totalorder %s523_s28, %s523_s28 }
  0x11   : > { %p3448_p6 = scmp.ne.s32.totalorder %s523_s28, %s3447_s0  ;;  %p3449_p7 = pneg %p3403_p5 }
  0x12   : > { %p3456_p11 = scmp.lt.s32.totalorder %s3447_s0, %s3447_s0 }
  0x13   : > { %p3450_p8 = pnand %p3449_p7, %p3448_p6 }
  0x14   : > { %p3457_p12 = por %p3456_p11, %p3455_p10 }
  0x15   : > { %p3451_p9 = pneg %p3450_p8 }
  0x17   : > { %p3458_p13 = pnand %p3457_p12, %p3451_p9 }
  0x19   : > { %3461 = shalt.err (!%p3458_p13)
}
  0x1a   : > { %s3474_s4 = smov [#allocation2]   ;;  %600 = sbr.rel (%p3602_p2) target bundleno = 8086 (0x1f96), region = 104 }
  0x1b   : > { %3405 = dma.vmem_to_smem (!%p3403_p5), %s523_s28, 16, %s3474_s4, [#allocation3]  }
  0x1f   : > { %3467 = dma.done.wait (%p3406_p3), [#allocation3], 16  }
  0x20   : > { %3469 = vsyncadd (%p3406_p3), [#allocation3], 4294967280 }
  0x21   : > { %606 = sfence }
  0x22   : > { %s4040_s22 = sld [smem:[#allocation7_spill]]  ;;  %p661_p0 = scmp.lt.s32.totalorder %s3595_s25, 1  ;;  %vm682_vm0 = vcmask 130048   ;;  %vm766_vm1 = vcmask 64512   ;;  %v820_v28 = vld [vmem:[%s4015_s6] sm:$0xff]  ;;  %vm926_vm2 = vcmask 1043456  }
  0x23   : > { %s4041_s3 = sld [smem:[#allocation5_spill]]  ;;  %3266 = vmatprep.subr.mxu1 %v820_v28  ;;  %v911_v48 = vld [vmem:[%s4017_s8] sm:$0xf]  ;;  %vm919_vm3 = vcmask 31744   ;;  %vm1068_vm6 = vcmask 1040384   ;;  %vm1079_vm7 = vcmask 1046528  }
  0x24   : > { %s4046_s25 = smov (!%p661_p0, %s3595_s25), 1  ;;  %s4042_s4 = sld [smem:[#allocation8_spill]]  ;;  %3267 = vmatpush3.msra.mxu1 %v820_v28  ;;  %v3084_v50 = vld [vmem:[%s4016_s7] ss:$0 sm:$0xff]  ;;  %vm1091_vm8 = vcmask 1045504   ;;  %vm1117_vm9 = vcmask 195584  }
  0x25   : > { %s3197_s24 = sshll.u32 %s4046_s25, 4  ;;  %s4044_s0 = sld [smem:[#allocation10_spill]]  ;;  %3271 = vmatprep.subr.msk.mxu1 %vm926_vm2, %v911_v48  ;;  %v3088_v54 = vld [vmem:[%s4018_s9] ss:$0 sm:$0xff]  ;;  %vm1514_vm14 = vcmask 1041408  }
  0x26   : > { %s3476_s29 = smov 16  }
  0x28   : > { %v674_v0 = vld [vmem:[%s4040_s22 + $0x8] sm:$0xff]  ;;  %v673_v1 = vld [vmem:[%s4040_s22] sm:$0xff] }
  0x29   : > { %3259 = vmatprep.subr.mxu0 %v674_v0  ;;  %s665_s28 = scalar_lea.vmem %s4041_s3, %s3197_s24  ;;  %s4043_s3 = sld [smem:[#allocation9_spill]] }
  0x2a   : > { %3260 = vmatpush3.msra.mxu0 %v674_v0  ;;  %v671_v2 = vld [vmem:[%s665_s28] sm:$0xff]  ;;  %v672_v3 = vld [vmem:[%s665_s28 + $0x8] sm:$0xff] }
  0x2b   : > { %3261 = vmatprep.subr.mxu0 %v673_v1  ;;  %3263 = vmatprep.mubr.msk.f32.mxu0 %vm682_vm0, %v671_v2  ;;  %v3079_v4 = vld [vmem:[%s4042_s4] ss:$0 sm:$0xff] }
  0x2c   : > { %3262 = vmatpush3.msra.mxu0 %v673_v1  ;;  %v3083_v43 = vld [vmem:[%s4044_s0] ss:$0 sm:$0xff]  ;;  %s3087_s0 = sld [smem:[#allocation2 + $0x4]] }
  0x2d   : > { %3264 = vmatmul.mubr.msk.f32.vlgmr.msra.gmra.mxu0 %vm682_vm0, %v672_v3 }
  0x2f   : > { %v3082_v40 = vld [vmem:[%s4043_s3] ss:$0 sm:$0xff] }
  0xed   : > { %v3265_v5 = vpop.f32.mrf.mxu0 }
  0xee   : > { %v3638_v6 = vadd.f32 %v3265_v5, %v3079_v4 }
  0xef   : > { %v755_v7 = vpop.f32.mrf.mxu0 }
  0xf0   : > { %v3640_v8 = vadd.f32 %v3079_v4, %v755_v7  ;;  %v768_v10 = vsel %vm766_vm1, %v3638_v6, 0.0 }
  0xf2   : > { %v767_v9 = vsel %vm766_vm1, %v3640_v8, 0.0 }
  0xf3   : > { %v769_v11 = vadd.f32 %v768_v10, %v767_v9 }
  0xf5   : > { %770 = vadd.xlane.f32.xlu0 %v769_v11 }
 0x17e   : > { %v771_v12 = vpop.xlane.xlu0 %770 }
 0x17f   : > { %v772_v13 = vrot.slane %v771_v12, 4 }
 0x181   : > { %v773_v14 = vadd.f32 %v772_v13, %v771_v12 }
 0x183   : > { %v774_v15 = vrot.slane %v773_v14, 2 }
 0x185   : > { %v775_v16 = vadd.f32 %v774_v15, %v773_v14 }
 0x187   : > { %v776_v17 = vrot.slane %v775_v16, 1 }
 0x189   : > { %v777_v18 = vadd.f32 %v776_v17, %v775_v16 }
 0x18b   : > { %3362 = vpush %v777_v18 }
 0x1bc   : > { %s3363_s30 = spop %3362 }
 0x1bd   : > { %v779_v19 = vstv %s3363_s30 }
 0x1be   : > { %v781_v20 = vmul.f32 0.0078125, %v779_v19 }
 0x1c0   : > { %v782_v21 = vsub.f32 %v3640_v8, %v781_v20  ;;  %v783_v22 = vsub.f32 %v3638_v6, %v781_v20 }
 0x1c2   : > { %v784_v23 = vmul.f32 %v782_v21, %v782_v21  ;;  %v785_v24 = vmul.f32 %v783_v22, %v783_v22 }
 0x1c4   : > { %v786_v25 = vsel %vm766_vm1, %v784_v23, 0.0  ;;  %v787_v26 = vsel %vm766_vm1, %v785_v24, 0.0 }
 0x1c5   : > { %v788_v27 = vadd.f32 %v787_v26, %v786_v25 }
 0x1c7   : > { %789 = vadd.xlane.f32.xlu0 %v788_v27 }
 0x250   : > { %v790_v29 = vpop.xlane.xlu0 %789 }
 0x251   : > { %v791_v30 = vrot.slane %v790_v29, 4 }
 0x253   : > { %v792_v31 = vadd.f32 %v791_v30, %v790_v29 }
 0x255   : > { %v793_v32 = vrot.slane %v792_v31, 2 }
 0x257   : > { %v794_v33 = vadd.f32 %v793_v32, %v792_v31  ;;  %v3092_v32 = vld [vmem:[%s4019_s10] ss:$0 sm:$0xff] }
 0x259   : > { %v795_v34 = vrot.slane %v794_v33, 1 }
 0x25b   : > { %v796_v35 = vadd.f32 %v795_v34, %v794_v33  ;;  %v1109_v33 = vld [vmem:[%s4021_s12 + $0x10] sm:$0xff] }
 0x25c   : > { %3276 = vmatprep.subr.mxu0 %v1109_v33 }
 0x25d   : > { %3364 = vpush %v796_v35  ;;  %3277 = vmatpush3.msra.mxu0 %v1109_v33 }
 0x28e   : > { %s3365_s1 = spop %3364 }
 0x28f   : > { %v798_v36 = vstv %s3365_s1  ;;  %s909_s1 = sld [smem:[#allocation2]] }
 0x290   : > { %v799_v37 = vmul.f32 0.0078125, %v798_v36  ;;  %v3093_v36 = vld [vmem:[%s4020_s11] ss:$0 sm:$0xff] }
 0x292   : > { %v800_v38 = vadd.f32 1e-06, %v799_v37 }
 0x294   : > { %3421 = vrsqrt.f32 %v800_v38 }
 0x295   : > { %v1007_v56 = vstv %s909_s1 }
 0x2a1   : > { %v3422_v39 = vpop.eup %3421 }
 0x2a2   : > { %v802_v41 = vmul.f32 %v3422_v39, %v782_v21  ;;  %v803_v42 = vmul.f32 %v3422_v39, %v783_v22  ;;  %v1108_v39 = vld [vmem:[%s4021_s12 + $0x8] sm:$0xff] }
 0x2a3   : > { %3278 = vmatprep.subr.mxu0 %v1108_v39 }
 0x2a4   : > { %v810_v44 = vmul.f32 %v3082_v40, %v802_v41  ;;  %v811_v45 = vmul.f32 %v3082_v40, %v803_v42  ;;  %v1107_v42 = vld [vmem:[%s4021_s12] sm:$0xff]  ;;  %3279 = vmatpush3.msra.mxu0 %v1108_v39 }
 0x2a5   : > { %3280 = vmatprep.subr.mxu0 %v1107_v42 }
 0x2a6   : > { %v818_v46 = vadd.f32 %v3083_v43, %v810_v44  ;;  %v819_v47 = vadd.f32 %v3083_v43, %v811_v45  ;;  %3281 = vmatpush3.msra.mxu0 %v1107_v42 }
 0x2a8   : > { %3268 = vmatprep.mubr.msk.f32.mxu1 %vm766_vm1, %v818_v46 }
 0x2a9   : > { %3269 = vmatmul.mubr.msk.f32.vlgmr.msra.gmra.mxu1 %vm766_vm1, %v819_v47 }
 0x2aa   : > { %3272 = vmatpush3.msk.msra.mxu1 %vm926_vm2, %v911_v48 }
 0x369   : > { %v3270_v49 = vpop.f32.mrf.mxu1 }
 0x36a   : > { %v3671_v53 = vadd.f32 %v3270_v49, %v3084_v50 }
 0x36b   : > { %v900_v51 = vpop.f32.mrf.mxu1 }
 0x36c   : > { %v3669_v52 = vadd.f32 %v3084_v50, %v900_v51 }
 0x36e   : > { %3273 = vmatprep.mubr.msk.f32.mxu1 %vm919_vm3, %v3669_v52 }
 0x36f   : > { %3274 = vmatmul.mubr.msk.f32.vlgmr.msra.gmra.mxu1 %vm919_vm3, %v3671_v53 }
 0x42f   : > { %v3275_v55 = vpop.f32.mrf.mxu1 }
 0x430   : > { %v1002_v57 = vadd.f32 %v3275_v55, %v3088_v54 }
 0x431   : > { %v996_v58 = vpop.f32.mrf.mxu1 }
 0x432   : > { %v1009_v59 = vmul.f32 %v1007_v56, %v1002_v57  ;;  %v997_v60 = vadd.f32 %v3088_v54, %v996_v58  ;;  %vm1006_vm4 = vcmp.gt.f32.partialorder %v1002_v57, 0.0 }
 0x434   : > { %v1008_v61 = vmul.f32 %v1007_v56, %v997_v60  ;;  %vm1005_vm5 = vcmp.gt.f32.partialorder %v997_v60, 0.0  ;;  %v1011_v62 = vsel %vm1006_vm4, %v1002_v57, %v1009_v59 }
 0x435   : > { %v1015_v1 = vsel %vm766_vm1, %v1011_v62, 0.0 }
 0x436   : > { %v1010_v63 = vsel %vm1005_vm5, %v997_v60, %v1008_v61 }
 0x437   : > { %v1014_v0 = vsel %vm766_vm1, %v1010_v63, 0.0 }
 0x438   : > { %v1016_v2 = vadd.f32 %v1015_v1, %v1014_v0 }
 0x43a   : > { %1017 = vadd.xlane.f32.xlu1 %v1016_v2 }
 0x4c3   : > { %v1018_v3 = vpop.xlane.xlu1 %1017 }
 0x4c4   : > { %v1019_v4 = vrot.slane %v1018_v3, 4 }
 0x4c6   : > { %v1020_v5 = vadd.f32 %v1019_v4, %v1018_v3  ;;  %v3094_v4 = vld [vmem:[%s4022_s13] ss:$0 sm:$0xff] }
 0x4c8   : > { %v1021_v7 = vrot.slane %v1020_v5, 2 }
 0x4ca   : > { %v1022_v9 = vadd.f32 %v1021_v7, %v1020_v5  ;;  %v1201_v7 = vstv %s3087_s0 }
 0x4cc   : > { %v1023_v10 = vrot.slane %v1022_v9, 1 }
 0x4ce   : > { %v1024_v11 = vadd.f32 %v1023_v10, %v1022_v9 }
 0x4d0   : > { %3366 = vpush %v1024_v11 }
 0x501   : > { %s3367_s3 = spop %3366 }
 0x502   : > { %v1026_v12 = vstv %s3367_s3 }
 0x503   : > { %v1027_v13 = vmul.f32 0.0078125, %v1026_v12 }
 0x505   : > { %v1028_v14 = vsub.f32 %v1010_v63, %v1027_v13  ;;  %v1029_v15 = vsub.f32 %v1011_v62, %v1027_v13 }
 0x507   : > { %v1030_v16 = vmul.f32 %v1028_v14, %v1028_v14  ;;  %v1031_v17 = vmul.f32 %v1029_v15, %v1029_v15 }
 0x509   : > { %v1032_v18 = vsel %vm766_vm1, %v1030_v16, 0.0  ;;  %v1033_v19 = vsel %vm766_vm1, %v1031_v17, 0.0 }
 0x50a   : > { %v1034_v20 = vadd.f32 %v1033_v19, %v1032_v18 }
 0x50c   : > { %1035 = vadd.xlane.f32.xlu1 %v1034_v20 }
 0x595   : > { %v1036_v21 = vpop.xlane.xlu1 %1035 }
 0x596   : > { %v1037_v22 = vrot.slane %v1036_v21, 4 }
 0x598   : > { %v1038_v23 = vadd.f32 %v1037_v22, %v1036_v21 }
 0x59a   : > { %v1039_v24 = vrot.slane %v1038_v23, 2 }
 0x59c   : > { %v1040_v25 = vadd.f32 %v1039_v24, %v1038_v23 }
 0x59e   : > { %v1041_v26 = vrot.slane %v1040_v25, 1 }
 0x5a0   : > { %v1042_v27 = vadd.f32 %v1041_v26, %v1040_v25 }
 0x5a2   : > { %3368 = vpush %v1042_v27 }
 0x5d3   : > { %s3369_s28 = spop %3368 }
 0x5d4   : > { %v1044_v28 = vstv %s3369_s28  ;;  %s3475_s28 = smov 8  }
 0x5d5   : > { %v1045_v29 = vmul.f32 0.0078125, %v1044_v28 }
 0x5d7   : > { %v1046_v30 = vadd.f32 1e-06, %v1045_v29 }
 0x5d9   : > { %3423 = vrsqrt.f32 %v1046_v30 }
 0x5e6   : > { %v3424_v31 = vpop.eup %3423 }
 0x5e7   : > { %v1048_v34 = vmul.f32 %v3424_v31, %v1028_v14  ;;  %v1049_v35 = vmul.f32 %v3424_v31, %v1029_v15 }
 0x5e9   : > { %v1056_v37 = vmul.f32 %v3092_v32, %v1048_v34  ;;  %v1057_v38 = vmul.f32 %v3092_v32, %v1049_v35  ;;  %v1260_v35 = vld [vmem:[%s4025_s16] sm:$0xff] }
 0x5ea   : > { %3285 = vmatprep.subr.mxu1 %v1260_v35 }
 0x5eb   : > { %v1064_v40 = vadd.f32 %v3093_v36, %v1056_v37  ;;  %v1065_v41 = vadd.f32 %v3093_v36, %v1057_v38  ;;  %3286 = vmatpush3.msra.mxu1 %v1260_v35 }
 0x5ed   : > { %v1069_v43 = vrot.slane %v1064_v40, 7  ;;  %v1070_v44 = vrot.slane %v1065_v41, 7 }
 0x5ef   : > { %v1071_v45 = vsel %vm1068_vm6, %v1069_v43, %v1070_v44  ;;  %v1076_v46 = vsel %vm1068_vm6, %v1070_v44, 0.0  ;;  %v1075_v47 = vsel %vm1068_vm6, 0.0, %v1069_v43 }
 0x5f0   : > { %v1081_v48 = vrot.slane %v1071_v45, 1  ;;  %v1083_v49 = vrot.slane %v1076_v46, 1  ;;  %v1080_v50 = vrot.slane %v1075_v47, 1  ;;  %v1092_v55 = vrot.slane %v1075_v47, 2 }
 0x5f1   : > { %v1093_v56 = vrot.slane %v1071_v45, 2  ;;  %v1095_v58 = vrot.slane %v1076_v46, 2 }
 0x5f2   : > { %v1084_v51 = vsel %vm1079_vm7, %v1081_v48, %v1083_v49  ;;  %v1082_v54 = vsel %vm1079_vm7, %v1080_v50, %v1081_v48  ;;  %v3098_v50 = vld [vmem:[%s4024_s15] ss:$0 sm:$0xff] }
 0x5f3   : > { %1087 = vrot.lane.b32.xlu1 %v1084_v51, %s3475_s28  ;;  %1085 = vrot.lane.b32.xlu0 %v1082_v54, %s3475_s28  ;;  %v1094_v57 = vsel %vm1091_vm8, %v1092_v55, %v1093_v56  ;;  %v1096_v59 = vsel %vm1091_vm8, %v1093_v56, %v1095_v58  ;;  %v3099_v58 = vld [vmem:[%s4026_s17] ss:$0 sm:$0xff] }
 0x5f7   : > { %1097 = vrot.lane.b32.xlu1 %v1094_v57, %s3476_s29  ;;  %v3104_v57 = vld [vmem:[%s4017_s8 + $0x4] sm:$0xf] }
 0x5f8   : > { %3290 = vmatprep.subr.msk.mxu0 %vm926_vm2, %v3104_v57 }
 0x5fb   : > { %1099 = vrot.lane.b32.xlu1 %v1096_v59, %s3476_s29 }
 0x665   : > { %v1088_v60 = vpop.permute.xlu1 %1087  ;;  %v1086_v61 = vpop.permute.xlu0 %1085 }
 0x666   : > { %v1103_v62 = vsel %vm766_vm1, %v1075_v47, %v1086_v61  ;;  %v1104_v1 = vsel %vm766_vm1, %v1071_v45, %v1088_v60  ;;  %v3097_v47 = vld [vmem:[%s4023_s14] ss:$0 sm:$0xff] }
 0x669   : > { %v1098_v63 = vpop.permute.xlu1 %1097 }
 0x66a   : > { %v1105_v0 = vsel %vm682_vm0, %v1103_v62, %v1098_v63 }
 0x66b   : > { %3282 = vmatprep.mubr.msk.f32.mxu0 %vm1117_vm9, %v1105_v0 }
 0x66d   : > { %v1100_v2 = vpop.permute.xlu1 %1099 }
 0x66e   : > { %v1106_v3 = vsel %vm682_vm0, %v1104_v1, %v1100_v2  ;;  %v3106_v1 = vld [vmem:[%s4018_s9 + $0x1] ss:$0 sm:$0xff] }
 0x66f   : > { %3283 = vmatmul.mubr.msk.f32.vlgmr.msra.gmra.mxu0 %vm1117_vm9, %v1106_v3 }
 0x670   : > { %3291 = vmatpush3.msk.msra.mxu0 %vm926_vm2, %v3104_v57 }
 0x72f   : > { %v3284_v5 = vpop.f32.mrf.mxu0 }
 0x730   : > { %v1196_v9 = vadd.f32 %v3284_v5, %v3094_v4 }
 0x731   : > { %v1190_v10 = vpop.f32.mrf.mxu0 }
 0x732   : > { %vm1200_vm10 = vcmp.gt.f32.partialorder %v1196_v9, 0.0  ;;  %v1203_v11 = vmul.f32 %v1201_v7, %v1196_v9  ;;  %v1191_v12 = vadd.f32 %v3094_v4, %v1190_v10 }
 0x734   : > { %vm1199_vm11 = vcmp.gt.f32.partialorder %v1191_v12, 0.0  ;;  %v1202_v13 = vmul.f32 %v1201_v7, %v1191_v12  ;;  %v1205_v14 = vsel %vm1200_vm10, %v1196_v9, %v1203_v11 }
 0x735   : > { %v1209_v17 = vsel %vm766_vm1, %v1205_v14, 0.0 }
 0x736   : > { %v1204_v15 = vsel %vm1199_vm11, %v1191_v12, %v1202_v13 }
 0x737   : > { %v1208_v16 = vsel %vm766_vm1, %v1204_v15, 0.0 }
 0x738   : > { %v1210_v18 = vadd.f32 %v1209_v17, %v1208_v16 }
 0x73a   : > { %1211 = vadd.xlane.f32.xlu0 %v1210_v18 }
 0x7c3   : > { %v1212_v19 = vpop.xlane.xlu0 %1211 }
 0x7c4   : > { %v1213_v20 = vrot.slane %v1212_v19, 4 }
 0x7c6   : > { %v1214_v21 = vadd.f32 %v1213_v20, %v1212_v19 }
 0x7c8   : > { %v1215_v22 = vrot.slane %v1214_v21, 2 }
 0x7ca   : > { %v1216_v23 = vadd.f32 %v1215_v22, %v1214_v21 }
 0x7cc   : > { %v1217_v24 = vrot.slane %v1216_v23, 1 }
 0x7ce   : > { %v1218_v25 = vadd.f32 %v1217_v24, %v1216_v23 }
 0x7d0   : > { %3370 = vpush %v1218_v25 }
 0x801   : > { %s3371_s5 = spop %3370 }
 0x802   : > { %v1220_v26 = vstv %s3371_s5  ;;  %s3103_s5 = sld [smem:[#allocation2 + $0x5]] }
 0x803   : > { %v1221_v27 = vmul.f32 0.0078125, %v1220_v26 }
 0x805   : > { %v1222_v28 = vsub.f32 %v1204_v15, %v1221_v27  ;;  %v1223_v29 = vsub.f32 %v1205_v14, %v1221_v27 }
 0x807   : > { %v1224_v30 = vmul.f32 %v1222_v28, %v1222_v28  ;;  %v1225_v31 = vmul.f32 %v1223_v29, %v1223_v29 }
 0x809   : > { %v1226_v32 = vsel %vm766_vm1, %v1224_v30, 0.0  ;;  %v1227_v33 = vsel %vm766_vm1, %v1225_v31, 0.0 }
 0x80a   : > { %v1228_v34 = vadd.f32 %v1227_v33, %v1226_v32 }
 0x80c   : > { %1229 = vadd.xlane.f32.xlu1 %v1228_v34 }
 0x895   : > { %v1230_v36 = vpop.xlane.xlu1 %1229 }
 0x896   : > { %v1231_v37 = vrot.slane %v1230_v36, 4 }
 0x898   : > { %v1232_v38 = vadd.f32 %v1231_v37, %v1230_v36 }
 0x89a   : > { %v1233_v39 = vrot.slane %v1232_v38, 2 }
 0x89c   : > { %v1234_v40 = vadd.f32 %v1233_v39, %v1232_v38 }
 0x89e   : > { %v1235_v41 = vrot.slane %v1234_v40, 1 }
 0x8a0   : > { %v1236_v42 = vadd.f32 %v1235_v41, %v1234_v40  ;;  %v3112_v41 = vld [vmem:[%s4019_s10 + $0x1] ss:$0 sm:$0xff] }
 0x8a2   : > { %3372 = vpush %v1236_v42  ;;  %v3116_v42 = vld [vmem:[%s4021_s12 + $0x28] sm:$0xff] }
 0x8a3   : > { %3295 = vmatprep.subr.mxu1 %v3116_v42 }
 0x8d3   : > { %s3373_s26 = spop %3372 }
 0x8d4   : > { %v1238_v43 = vstv %s3373_s26  ;;  %s3102_s26 = sld [smem:[#allocation2 + $0x1]] }
 0x8d5   : > { %v1239_v44 = vmul.f32 0.0078125, %v1238_v43 }
 0x8d7   : > { %v1240_v45 = vadd.f32 1e-06, %v1239_v44 }
 0x8d9   : > { %3425 = vrsqrt.f32 %v1240_v45  ;;  %v3113_v45 = vld [vmem:[%s4020_s11 + $0x1] ss:$0 sm:$0xff] }
 0x8da   : > { %v1451_v3 = vstv %s3102_s26 }
 0x8e6   : > { %v3426_v46 = vpop.eup %3425 }
 0x8e7   : > { %v1242_v48 = vmul.f32 %v3426_v46, %v1222_v28  ;;  %v1243_v49 = vmul.f32 %v3426_v46, %v1223_v29 }
 0x8e9   : > { %v1250_v51 = vmul.f32 %v3097_v47, %v1242_v48  ;;  %v1251_v54 = vmul.f32 %v3097_v47, %v1243_v49  ;;  %v3115_v48 = vld [vmem:[%s4021_s12 + $0x20] sm:$0xff] }
 0x8eb   : > { %v1258_v55 = vadd.f32 %v3098_v50, %v1250_v51  ;;  %v1259_v56 = vadd.f32 %v3098_v50, %v1251_v54  ;;  %v3114_v51 = vld [vmem:[%s4021_s12 + $0x18] sm:$0xff] }
 0x8ed   : > { %3287 = vmatprep.mubr.msk.f32.mxu1 %vm766_vm1, %v1258_v55 }
 0x8ee   : > { %3288 = vmatmul.mubr.msk.f32.vlgmr.msra.gmra.mxu1 %vm766_vm1, %v1259_v56 }
 0x8ef   : > { %3296 = vmatpush3.msra.mxu1 %v3116_v42 }
 0x8f0   : > { %3297 = vmatprep.subr.mxu1 %v3115_v48 }
 0x8f1   : > { %3298 = vmatpush3.msra.mxu1 %v3115_v48 }
 0x8f2   : > { %3299 = vmatprep.subr.mxu1 %v3114_v51 }
 0x8f3   : > { %3300 = vmatpush3.msra.mxu1 %v3114_v51 }
 0x9ae   : > { %v3289_v59 = vpop.f32.mrf.mxu1 }
 0x9af   : > { %v3742_v60 = vadd.f32 %v3289_v59, %v3099_v58 }
 0x9b0   : > { %v1340_v61 = vpop.f32.mrf.mxu1 }
 0x9b1   : > { %v3744_v62 = vadd.f32 %v3099_v58, %v1340_v61  ;;  %v3752_v0 = vadd.f32 %v3742_v60, %v3671_v53 }
 0x9b3   : > { %v3748_v63 = vadd.f32 %v3744_v62, %v3669_v52 }
 0x9b5   : > { %3292 = vmatprep.mubr.msk.f32.mxu0 %vm919_vm3, %v3748_v63 }
 0x9b6   : > { %3293 = vmatmul.mubr.msk.f32.vlgmr.msra.gmra.mxu0 %vm919_vm3, %v3752_v0 }
 0xa76   : > { %v3294_v2 = vpop.f32.mrf.mxu0 }
 0xa77   : > { %v1446_v4 = vadd.f32 %v3294_v2, %v3106_v1 }
 0xa78   : > { %v1440_v52 = vpop.f32.mrf.mxu0 }
 0xa79   : > { %vm1450_vm12 = vcmp.gt.f32.partialorder %v1446_v4, 0.0  ;;  %v1453_v5 = vmul.f32 %v1451_v3, %v1446_v4  ;;  %v1441_v7 = vadd.f32 %v3106_v1, %v1440_v52 }
 0xa7b   : > { %vm1449_vm13 = vcmp.gt.f32.partialorder %v1441_v7, 0.0  ;;  %v1452_v53 = vmul.f32 %v1451_v3, %v1441_v7  ;;  %v1455_v9 = vsel %vm1450_vm12, %v1446_v4, %v1453_v5 }
 0xa7c   : > { %v1461_v12 = vsel %vm766_vm1, %v1455_v9, 0.0 }
 0xa7d   : > { %v1454_v10 = vsel %vm1449_vm13, %v1441_v7, %v1452_v53 }
 0xa7e   : > { %v1460_v11 = vsel %vm766_vm1, %v1454_v10, 0.0 }
 0xa7f   : > { %v1462_v13 = vadd.f32 %v1461_v12, %v1460_v11 }
 0xa81   : > { %1463 = vadd.xlane.f32.xlu0 %v1462_v13 }
 0xb0a   : > { %v1464_v14 = vpop.xlane.xlu0 %1463 }
 0xb0b   : > { %v1465_v15 = vrot.slane %v1464_v14, 4 }
 0xb0d   : > { %v1466_v16 = vadd.f32 %v1465_v15, %v1464_v14 }
 0xb0f   : > { %v1467_v17 = vrot.slane %v1466_v16, 2 }
 0xb11   : > { %v1468_v18 = vadd.f32 %v1467_v17, %v1466_v16  ;;  %v3118_v17 = vld [vmem:[%s4022_s13 + $0x1] ss:$0 sm:$0xff] }
 0xb13   : > { %v1469_v19 = vrot.slane %v1468_v18, 1 }
 0xb15   : > { %v1470_v20 = vadd.f32 %v1469_v19, %v1468_v18  ;;  %v1646_v19 = vstv %s3103_s5 }
 0xb17   : > { %3374 = vpush %v1470_v20 }
 0xb48   : > { %s3375_s0 = spop %3374 }
 0xb49   : > { %v1472_v21 = vstv %s3375_s0 }
 0xb4a   : > { %v1473_v22 = vmul.f32 0.0078125, %v1472_v21 }
 0xb4c   : > { %v1474_v23 = vsub.f32 %v1454_v10, %v1473_v22  ;;  %v1475_v24 = vsub.f32 %v1455_v9, %v1473_v22 }
 0xb4e   : > { %v1476_v25 = vmul.f32 %v1474_v23, %v1474_v23  ;;  %v1477_v26 = vmul.f32 %v1475_v24, %v1475_v24 }
 0xb50   : > { %v1478_v27 = vsel %vm766_vm1, %v1476_v25, 0.0  ;;  %v1479_v28 = vsel %vm766_vm1, %v1477_v26, 0.0 }
 0xb51   : > { %v1480_v29 = vadd.f32 %v1479_v28, %v1478_v27 }
 0xb53   : > { %1481 = vadd.xlane.f32.xlu0 %v1480_v29 }
 0xbdc   : > { %v1482_v30 = vpop.xlane.xlu0 %1481 }
 0xbdd   : > { %v1483_v31 = vrot.slane %v1482_v30, 4 }
 0xbdf   : > { %v1484_v32 = vadd.f32 %v1483_v31, %v1482_v30 }
 0xbe1   : > { %v1485_v33 = vrot.slane %v1484_v32, 2 }
 0xbe3   : > { %v1486_v34 = vadd.f32 %v1485_v33, %v1484_v32 }
 0xbe5   : > { %v1487_v35 = vrot.slane %v1486_v34, 1 }
 0xbe7   : > { %v1488_v36 = vadd.f32 %v1487_v35, %v1486_v34 }
 0xbe9   : > { %3376 = vpush %v1488_v36 }
 0xc1a   : > { %s3377_s4 = spop %3376 }
 0xc1b   : > { %v1490_v37 = vstv %s3377_s4 }
 0xc1c   : > { %v1491_v38 = vmul.f32 0.0078125, %v1490_v37 }
 0xc1e   : > { %v1492_v39 = vadd.f32 1e-06, %v1491_v38 }
 0xc20   : > { %3427 = vrsqrt.f32 %v1492_v39 }
 0xc2d   : > { %v3428_v40 = vpop.eup %3427 }
 0xc2e   : > { %v1494_v43 = vmul.f32 %v3428_v40, %v1474_v23  ;;  %v1495_v44 = vmul.f32 %v3428_v40, %v1475_v24 }
 0xc30   : > { %v1502_v46 = vmul.f32 %v3112_v41, %v1494_v43  ;;  %v1503_v47 = vmul.f32 %v3112_v41, %v1495_v44 }
 0xc32   : > { %v1510_v49 = vadd.f32 %v3113_v45, %v1502_v46  ;;  %v1511_v50 = vadd.f32 %v3113_v45, %v1503_v47  ;;  %v3125_v46 = vld [vmem:[%s4025_s16 + $0x8] sm:$0xff] }
 0xc33   : > { %3304 = vmatprep.subr.mxu0 %v3125_v46 }
 0xc34   : > { %v1515_v54 = vrot.slane %v1510_v49, 6  ;;  %v1516_v55 = vrot.slane %v1511_v50, 6  ;;  %3305 = vmatpush3.msra.mxu0 %v3125_v46 }
 0xc36   : > { %v1517_v56 = vsel %vm1514_vm14, %v1515_v54, %v1516_v55  ;;  %v1522_v57 = vsel %vm1514_vm14, %v1516_v55, 0.0  ;;  %v1521_v58 = vsel %vm1514_vm14, 0.0, %v1515_v54 }
 0xc37   : > { %v1526_v59 = vrot.slane %v1517_v56, 2  ;;  %v1528_v61 = vrot.slane %v1522_v57, 2  ;;  %v1525_v1 = vrot.slane %v1521_v58, 2  ;;  %v1536_v4 = vrot.slane %v1521_v58, 4 }
 0xc38   : > { %v1537_v52 = vrot.slane %v1517_v56, 4  ;;  %v1539_v7 = vrot.slane %v1522_v57, 4 }
 0xc39   : > { %v1529_v2 = vsel %vm1091_vm8, %v1526_v59, %v1528_v61  ;;  %v1527_v3 = vsel %vm1091_vm8, %v1525_v1, %v1526_v59  ;;  %v3123_v61 = vld [vmem:[%s4023_s14 + $0x1] ss:$0 sm:$0xff] }
 0xc3a   : > { %1532 = vrot.lane.b32.xlu1 %v1529_v2, %s3475_s28  ;;  %1530 = vrot.lane.b32.xlu0 %v1527_v3, %s3475_s28  ;;  %v1538_v5 = vsel %vm926_vm2, %v1536_v4, %v1537_v52  ;;  %v1540_v53 = vsel %vm926_vm2, %v1537_v52, %v1539_v7  ;;  %v3124_v3 = vld [vmem:[%s4024_s15 + $0x1] ss:$0 sm:$0xff] }
 0xc3e   : > { %1541 = vrot.lane.b32.xlu1 %v1538_v5, %s3476_s29 }
 0xc42   : > { %1543 = vrot.lane.b32.xlu1 %v1540_v53, %s3476_s29  ;;  %v3132_v53 = vld [vmem:[%s4017_s8 + $0x8] sm:$0xf] }
 0xc43   : > { %3309 = vmatprep.subr.msk.mxu1 %vm926_vm2, %v3132_v53 }
 0xcac   : > { %v1533_v9 = vpop.permute.xlu1 %1532  ;;  %v1531_v10 = vpop.permute.xlu0 %1530 }
 0xcad   : > { %v1547_v11 = vsel %vm766_vm1, %v1521_v58, %v1531_v10  ;;  %v1548_v14 = vsel %vm766_vm1, %v1517_v56, %v1533_v9  ;;  %v3127_v9 = vld [vmem:[%s4026_s17 + $0x1] ss:$0 sm:$0xff] }
 0xcb0   : > { %v1542_v12 = vpop.permute.xlu1 %1541 }
 0xcb1   : > { %v1549_v13 = vsel %vm682_vm0, %v1547_v11, %v1542_v12 }
 0xcb2   : > { %3301 = vmatprep.mubr.msk.f32.mxu1 %vm1117_vm9, %v1549_v13 }
 0xcb4   : > { %v1544_v15 = vpop.permute.xlu1 %1543 }
 0xcb5   : > { %v1550_v16 = vsel %vm682_vm0, %v1548_v14, %v1544_v15 }
 0xcb6   : > { %3302 = vmatmul.mubr.msk.f32.vlgmr.msra.gmra.mxu1 %vm1117_vm9, %v1550_v16  ;;  %v3134_v16 = vld [vmem:[%s4018_s9 + $0x2] ss:$0 sm:$0xff] }
 0xcb7   : > { %3310 = vmatpush3.msk.msra.mxu1 %vm926_vm2, %v3132_v53 }
 0xd76   : > { %v3303_v18 = vpop.f32.mrf.mxu1 }
 0xd77   : > { %v1641_v20 = vadd.f32 %v3303_v18, %v3118_v17 }
 0xd78   : > { %v1635_v21 = vpop.f32.mrf.mxu1 }
 0xd79   : > { %vm1645_vm15 = vcmp.gt.f32.partialorder %v1641_v20, 0.0  ;;  %v1648_v22 = vmul.f32 %v1646_v19, %v1641_v20  ;;  %v1636_v23 = vadd.f32 %v3118_v17, %v1635_v21 }
 0xd7b   : > { %vm1644_vm4 = vcmp.gt.f32.partialorder %v1636_v23, 0.0  ;;  %v1647_v24 = vmul.f32 %v1646_v19, %v1636_v23  ;;  %v1650_v25 = vsel %vm1645_vm15, %v1641_v20, %v1648_v22 }
 0xd7c   : > { %v1656_v28 = vsel %vm766_vm1, %v1650_v25, 0.0 }
 0xd7d   : > { %v1649_v26 = vsel %vm1644_vm4, %v1636_v23, %v1647_v24 }
 0xd7e   : > { %v1655_v27 = vsel %vm766_vm1, %v1649_v26, 0.0 }
 0xd7f   : > { %v1657_v29 = vadd.f32 %v1656_v28, %v1655_v27 }
 0xd81   : > { %1658 = vadd.xlane.f32.xlu0 %v1657_v29 }
 0xe0a   : > { %v1659_v30 = vpop.xlane.xlu0 %1658 }
 0xe0b   : > { %v1660_v31 = vrot.slane %v1659_v30, 4 }
 0xe0d   : > { %v1661_v32 = vadd.f32 %v1660_v31, %v1659_v30 }
 0xe0f   : > { %v1662_v33 = vrot.slane %v1661_v32, 2 }
 0xe11   : > { %v1663_v34 = vadd.f32 %v1662_v33, %v1661_v32 }
 0xe13   : > { %v1664_v35 = vrot.slane %v1663_v34, 1 }
 0xe15   : > { %v1665_v36 = vadd.f32 %v1664_v35, %v1663_v34 }
 0xe17   : > { %3378 = vpush %v1665_v36 }
 0xe48   : > { %s3379_s26 = spop %3378 }
 0xe49   : > { %v1667_v37 = vstv %s3379_s26  ;;  %s3131_s26 = sld [smem:[#allocation2 + $0x6]] }
 0xe4a   : > { %v1668_v38 = vmul.f32 0.0078125, %v1667_v37 }
 0xe4c   : > { %v1669_v39 = vsub.f32 %v1649_v26, %v1668_v38  ;;  %v1670_v40 = vsub.f32 %v1650_v25, %v1668_v38 }
 0xe4e   : > { %v1671_v41 = vmul.f32 %v1669_v39, %v1669_v39  ;;  %v1672_v42 = vmul.f32 %v1670_v40, %v1670_v40 }
 0xe50   : > { %v1673_v43 = vsel %vm766_vm1, %v1671_v41, 0.0  ;;  %v1674_v44 = vsel %vm766_vm1, %v1672_v42, 0.0 }
 0xe51   : > { %v1675_v45 = vadd.f32 %v1674_v44, %v1673_v43 }
 0xe53   : > { %1676 = vadd.xlane.f32.xlu1 %v1675_v45 }
 0xedc   : > { %v1677_v47 = vpop.xlane.xlu1 %1676 }
 0xedd   : > { %v1678_v48 = vrot.slane %v1677_v47, 4 }
 0xedf   : > { %v1679_v49 = vadd.f32 %v1678_v48, %v1677_v47 }
 0xee1   : > { %v1680_v50 = vrot.slane %v1679_v49, 2 }
 0xee3   : > { %v1681_v51 = vadd.f32 %v1680_v50, %v1679_v49 }
 0xee5   : > { %v1682_v54 = vrot.slane %v1681_v51, 1 }
 0xee7   : > { %v1683_v55 = vadd.f32 %v1682_v54, %v1681_v51 }
 0xee9   : > { %3380 = vpush %v1683_v55 }
 0xf1a   : > { %s3381_s0 = spop %3380 }
 0xf1b   : > { %v1685_v56 = vstv %s3381_s0  ;;  %s3130_s0 = sld [smem:[#allocation2 + $0x2]] }
 0xf1c   : > { %v1686_v57 = vmul.f32 0.0078125, %v1685_v56  ;;  %v3140_v56 = vld [vmem:[%s4019_s10 + $0x2] ss:$0 sm:$0xff] }
 0xf1e   : > { %v1687_v58 = vadd.f32 1e-06, %v1686_v57  ;;  %v3144_v57 = vld [vmem:[%s4021_s12 + $0x40] sm:$0xff] }
 0xf1f   : > { %3314 = vmatprep.subr.mxu0 %v3144_v57 }
 0xf20   : > { %3429 = vrsqrt.f32 %v1687_v58 }
 0xf21   : > { %v1900_v18 = vstv %s3130_s0 }
 0xf2d   : > { %v3430_v59 = vpop.eup %3429 }
 0xf2e   : > { %v1689_v1 = vmul.f32 %v3430_v59, %v1669_v39  ;;  %v1690_v2 = vmul.f32 %v3430_v59, %v1670_v40 }
 0xf30   : > { %v1697_v4 = vmul.f32 %v3123_v61, %v1689_v1  ;;  %v1698_v52 = vmul.f32 %v3123_v61, %v1690_v2  ;;  %v3141_v61 = vld [vmem:[%s4020_s11 + $0x2] ss:$0 sm:$0xff] }
 0xf32   : > { %v1705_v5 = vadd.f32 %v3124_v3, %v1697_v4  ;;  %v1706_v7 = vadd.f32 %v3124_v3, %v1698_v52  ;;  %v3143_v3 = vld [vmem:[%s4021_s12 + $0x38] sm:$0xff] }
 0xf34   : > { %3306 = vmatprep.mubr.msk.f32.mxu0 %vm766_vm1, %v1705_v5  ;;  %v3142_v5 = vld [vmem:[%s4021_s12 + $0x30] sm:$0xff] }
 0xf35   : > { %3307 = vmatmul.mubr.msk.f32.vlgmr.msra.gmra.mxu0 %vm766_vm1, %v1706_v7 }
 0xf36   : > { %3315 = vmatpush3.msra.mxu0 %v3144_v57 }
 0xf37   : > { %3316 = vmatprep.subr.mxu0 %v3143_v3 }
 0xf38   : > { %3317 = vmatpush3.msra.mxu0 %v3143_v3  ;;  %v3153_v3 = vld [vmem:[%s4025_s16 + $0x10] sm:$0xff] }
 0xf39   : > { %3318 = vmatprep.subr.mxu0 %v3142_v5  ;;  %3323 = vmatprep.subr.mxu1 %v3153_v3 }
 0xf3a   : > { %3319 = vmatpush3.msra.mxu0 %v3142_v5 }
 0xff5   : > { %v3308_v10 = vpop.f32.mrf.mxu0 }
 0xff6   : > { %v3823_v11 = vadd.f32 %v3308_v10, %v3127_v9 }
 0xff7   : > { %v1789_v12 = vpop.f32.mrf.mxu0 }
 0xff8   : > { %v3825_v13 = vadd.f32 %v3127_v9, %v1789_v12  ;;  %v3833_v15 = vadd.f32 %v3823_v11, %v3752_v0 }
 0xffa   : > { %v3829_v14 = vadd.f32 %v3825_v13, %v3748_v63 }
 0xffc   : > { %3311 = vmatprep.mubr.msk.f32.mxu1 %vm919_vm3, %v3829_v14 }
 0xffd   : > { %3312 = vmatmul.mubr.msk.f32.vlgmr.msra.gmra.mxu1 %vm919_vm3, %v3833_v15 }
 0xffe   : > { %3324 = vmatpush3.msra.mxu1 %v3153_v3 }
0x10bd   : > { %v3313_v17 = vpop.f32.mrf.mxu1 }
0x10be   : > { %v1895_v19 = vadd.f32 %v3313_v17, %v3134_v16 }
0x10bf   : > { %v1889_v63 = vpop.f32.mrf.mxu1 }
0x10c0   : > { %vm1899_vm5 = vcmp.gt.f32.partialorder %v1895_v19, 0.0  ;;  %v1902_v20 = vmul.f32 %v1900_v18, %v1895_v19  ;;  %v1890_v21 = vadd.f32 %v3134_v16, %v1889_v63 }
0x10c2   : > { %vm1898_vm10 = vcmp.gt.f32.partialorder %v1890_v21, 0.0  ;;  %v1901_v0 = vmul.f32 %v1900_v18, %v1890_v21  ;;  %v1904_v22 = vsel %vm1899_vm5, %v1895_v19, %v1902_v20 }
0x10c3   : > { %v1910_v25 = vsel %vm766_vm1, %v1904_v22, 0.0 }
0x10c4   : > { %v1903_v23 = vsel %vm1898_vm10, %v1890_v21, %v1901_v0 }
0x10c5   : > { %v1909_v24 = vsel %vm766_vm1, %v1903_v23, 0.0 }
0x10c6   : > { %v1911_v26 = vadd.f32 %v1910_v25, %v1909_v24 }
0x10c8   : > { %1912 = vadd.xlane.f32.xlu0 %v1911_v26 }
0x1151   : > { %v1913_v27 = vpop.xlane.xlu0 %1912 }
0x1152   : > { %v1914_v28 = vrot.slane %v1913_v27, 4 }
0x1154   : > { %v1915_v29 = vadd.f32 %v1914_v28, %v1913_v27 }
0x1156   : > { %v1916_v30 = vrot.slane %v1915_v29, 2 }
0x1158   : > { %v1917_v31 = vadd.f32 %v1916_v30, %v1915_v29 }
0x115a   : > { %v1918_v32 = vrot.slane %v1917_v31, 1 }
0x115c   : > { %v1919_v33 = vadd.f32 %v1918_v32, %v1917_v31  ;;  %v3146_v32 = vld [vmem:[%s4022_s13 + $0x2] ss:$0 sm:$0xff] }
0x115e   : > { %3382 = vpush %v1919_v33 }
0x118f   : > { %s3383_s5 = spop %3382 }
0x1190   : > { %v1921_v34 = vstv %s3383_s5 }
0x1191   : > { %v1922_v35 = vmul.f32 0.0078125, %v1921_v34  ;;  %v2094_v34 = vstv %s3131_s26 }
0x1193   : > { %v1923_v36 = vsub.f32 %v1903_v23, %v1922_v35  ;;  %v1924_v37 = vsub.f32 %v1904_v22, %v1922_v35 }
0x1195   : > { %v1925_v38 = vmul.f32 %v1923_v36, %v1923_v36  ;;  %v1926_v39 = vmul.f32 %v1924_v37, %v1924_v37 }
0x1197   : > { %v1927_v40 = vsel %vm766_vm1, %v1925_v38, 0.0  ;;  %v1928_v41 = vsel %vm766_vm1, %v1926_v39, 0.0 }
0x1198   : > { %v1929_v42 = vadd.f32 %v1928_v41, %v1927_v40 }
0x119a   : > { %1930 = vadd.xlane.f32.xlu0 %v1929_v42 }
0x1223   : > { %v1931_v43 = vpop.xlane.xlu0 %1930 }
0x1224   : > { %v1932_v44 = vrot.slane %v1931_v43, 4 }
0x1226   : > { %v1933_v45 = vadd.f32 %v1932_v44, %v1931_v43 }
0x1228   : > { %v1934_v46 = vrot.slane %v1933_v45, 2 }
0x122a   : > { %v1935_v47 = vadd.f32 %v1934_v46, %v1933_v45 }
0x122c   : > { %v1936_v48 = vrot.slane %v1935_v47, 1 }
0x122e   : > { %v1937_v49 = vadd.f32 %v1936_v48, %v1935_v47 }
0x1230   : > { %3384 = vpush %v1937_v49 }
0x1261   : > { %s3385_s23 = spop %3384 }
0x1262   : > { %v1939_v50 = vstv %s3385_s23 }
0x1263   : > { %v1940_v51 = vmul.f32 0.0078125, %v1939_v50 }
0x1265   : > { %v1941_v54 = vadd.f32 1e-06, %v1940_v51 }
0x1267   : > { %3431 = vrsqrt.f32 %v1941_v54 }
0x1274   : > { %v3432_v55 = vpop.eup %3431 }
0x1275   : > { %v1943_v58 = vmul.f32 %v3432_v55, %v1923_v36  ;;  %v1944_v59 = vmul.f32 %v3432_v55, %v1924_v37 }
0x1277   : > { %v1951_v1 = vmul.f32 %v3140_v56, %v1943_v58  ;;  %v1952_v2 = vmul.f32 %v3140_v56, %v1944_v59 }
0x1279   : > { %v1959_v4 = vadd.f32 %v3141_v61, %v1951_v1  ;;  %v1960_v52 = vadd.f32 %v3141_v61, %v1952_v2 }
0x127b   : > { %v1963_v7 = vrot.slane %v1959_v4, 7  ;;  %v1964_v53 = vrot.slane %v1960_v52, 7 }
0x127d   : > { %v1965_v9 = vsel %vm1068_vm6, %v1963_v7, %v1964_v53  ;;  %v1970_v10 = vsel %vm1068_vm6, %v1964_v53, 0.0  ;;  %v1969_v12 = vsel %vm1068_vm6, 0.0, %v1963_v7 }
0x127e   : > { %v1974_v16 = vrot.slane %v1965_v9, 1  ;;  %v1976_v17 = vrot.slane %v1970_v10, 1  ;;  %v1973_v18 = vrot.slane %v1969_v12, 1  ;;  %v1984_v20 = vrot.slane %v1969_v12, 2 }
0x127f   : > { %v1985_v21 = vrot.slane %v1965_v9, 2  ;;  %v1987_v22 = vrot.slane %v1970_v10, 2 }
0x1280   : > { %v1977_v19 = vsel %vm1079_vm7, %v1974_v16, %v1976_v17  ;;  %v1975_v63 = vsel %vm1079_vm7, %v1973_v18, %v1974_v16 }
0x1281   : > { %1980 = vrot.lane.b32.xlu1 %v1977_v19, %s3475_s28  ;;  %1978 = vrot.lane.b32.xlu0 %v1975_v63, %s3475_s28  ;;  %v1986_v0 = vsel %vm1091_vm8, %v1984_v20, %v1985_v21  ;;  %v1988_v23 = vsel %vm1091_vm8, %v1985_v21, %v1987_v22  ;;  %v3151_v19 = vld [vmem:[%s4023_s14 + $0x2] ss:$0 sm:$0xff] }
0x1282   : > { %v3152_v21 = vld [vmem:[%s4024_s15 + $0x2] ss:$0 sm:$0xff] }
0x1285   : > { %1989 = vrot.lane.b32.xlu1 %v1986_v0, %s3476_s29 }
0x1289   : > { %1991 = vrot.lane.b32.xlu1 %v1988_v23, %s3476_s29 }
0x12f3   : > { %v1981_v24 = vpop.permute.xlu1 %1980  ;;  %v1979_v25 = vpop.permute.xlu0 %1978 }
0x12f4   : > { %v1995_v26 = vsel %vm766_vm1, %v1969_v12, %v1979_v25  ;;  %v1996_v29 = vsel %vm766_vm1, %v1965_v9, %v1981_v24  ;;  %v3160_v25 = vld [vmem:[%s4017_s8 + $0xc] sm:$0xf] }
0x12f5   : > { %3328 = vmatprep.subr.msk.mxu0 %vm926_vm2, %v3160_v25 }
0x12f7   : > { %v1990_v27 = vpop.permute.xlu1 %1989 }
0x12f8   : > { %v1997_v28 = vsel %vm682_vm0, %v1995_v26, %v1990_v27  ;;  %v3155_v26 = vld [vmem:[%s4026_s17 + $0x2] ss:$0 sm:$0xff] }
0x12f9   : > { %3320 = vmatprep.mubr.msk.f32.mxu0 %vm1117_vm9, %v1997_v28  ;;  %v1801_v28 = vadd.f32 %v3823_v11, %v3742_v60  ;;  %v3162_v60 = vld [vmem:[%s4018_s9 + $0x3] ss:$0 sm:$0xff] }
0x12fb   : > { %v1992_v30 = vpop.permute.xlu1 %1991 }
0x12fc   : > { %v1998_v31 = vsel %vm682_vm0, %v1996_v29, %v1992_v30 }
0x12fd   : > { %3321 = vmatmul.mubr.msk.f32.vlgmr.msra.gmra.mxu0 %vm1117_vm9, %v1998_v31  ;;  %v1800_v31 = vadd.f32 %v3825_v13, %v3744_v62 }
0x12fe   : > { %3329 = vmatpush3.msk.msra.mxu0 %vm926_vm2, %v3160_v25  ;;  %v3170_v25 = vld [vmem:[%s4021_s12 + $0x48] sm:$0xff] }
0x13bd   : > { %v3322_v33 = vpop.f32.mrf.mxu0 }
0x13be   : > { %v2089_v35 = vadd.f32 %v3322_v33, %v3146_v32 }
0x13bf   : > { %v2083_v36 = vpop.f32.mrf.mxu0 }
0x13c0   : > { %vm2093_vm6 = vcmp.gt.f32.partialorder %v2089_v35, 0.0  ;;  %v2096_v37 = vmul.f32 %v2094_v34, %v2089_v35  ;;  %v2084_v38 = vadd.f32 %v3146_v32, %v2083_v36 }
0x13c2   : > { %vm2092_vm7 = vcmp.gt.f32.partialorder %v2084_v38, 0.0  ;;  %v2095_v39 = vmul.f32 %v2094_v34, %v2084_v38  ;;  %v2098_v40 = vsel %vm2093_vm6, %v2089_v35, %v2096_v37 }
0x13c3   : > { %v2104_v43 = vsel %vm766_vm1, %v2098_v40, 0.0 }
0x13c4   : > { %v2097_v41 = vsel %vm2092_vm7, %v2084_v38, %v2095_v39 }
0x13c5   : > { %v2103_v42 = vsel %vm766_vm1, %v2097_v41, 0.0 }
0x13c6   : > { %v2105_v44 = vadd.f32 %v2104_v43, %v2103_v42 }
0x13c8   : > { %2106 = vadd.xlane.f32.xlu0 %v2105_v44 }
0x1451   : > { %v2107_v45 = vpop.xlane.xlu0 %2106 }
0x1452   : > { %v2108_v46 = vrot.slane %v2107_v45, 4 }
0x1454   : > { %v2109_v47 = vadd.f32 %v2108_v46, %v2107_v45 }
0x1456   : > { %v2110_v48 = vrot.slane %v2109_v47, 2 }
0x1458   : > { %v2111_v49 = vadd.f32 %v2110_v48, %v2109_v47 }
0x145a   : > { %v2112_v50 = vrot.slane %v2111_v49, 1 }
0x145c   : > { %v2113_v51 = vadd.f32 %v2112_v50, %v2111_v49 }
0x145e   : > { %3386 = vpush %v2113_v51 }
0x148f   : > { %s3387_s0 = spop %3386 }
0x1490   : > { %v2115_v54 = vstv %s3387_s0  ;;  %s3478_s0 = smov 120  }
0x1491   : > { %v2116_v55 = vmul.f32 0.0078125, %v2115_v54 }
0x1493   : > { %v2117_v56 = vsub.f32 %v2097_v41, %v2116_v55  ;;  %v2118_v57 = vsub.f32 %v2098_v40, %v2116_v55 }
0x1495   : > { %v2119_v58 = vmul.f32 %v2117_v56, %v2117_v56  ;;  %v2120_v59 = vmul.f32 %v2118_v57, %v2118_v57 }
0x1497   : > { %v2121_v61 = vsel %vm766_vm1, %v2119_v58, 0.0  ;;  %v2122_v1 = vsel %vm766_vm1, %v2120_v59, 0.0 }
0x1498   : > { %v2123_v2 = vadd.f32 %v2122_v1, %v2121_v61 }
0x149a   : > { %2124 = vadd.xlane.f32.xlu1 %v2123_v2 }
0x1523   : > { %v2125_v4 = vpop.xlane.xlu1 %2124 }
0x1524   : > { %v2126_v52 = vrot.slane %v2125_v4, 4 }
0x1526   : > { %v2127_v5 = vadd.f32 %v2126_v52, %v2125_v4 }
0x1528   : > { %v2128_v7 = vrot.slane %v2127_v5, 2 }
0x152a   : > { %v2129_v53 = vadd.f32 %v2128_v7, %v2127_v5 }
0x152c   : > { %v2130_v9 = vrot.slane %v2129_v53, 1 }
0x152e   : > { %v2131_v10 = vadd.f32 %v2130_v9, %v2129_v53 }
0x1530   : > { %3388 = vpush %v2131_v10 }
0x1561   : > { %s3389_s5 = spop %3388 }
0x1562   : > { %v2133_v12 = vstv %s3389_s5  ;;  %s3158_s5 = sld [smem:[#allocation2 + $0x3]] }
0x1563   : > { %v2134_v16 = vmul.f32 0.0078125, %v2133_v12 }
0x1565   : > { %v2135_v17 = vadd.f32 1e-06, %v2134_v16 }
0x1567   : > { %3433 = vrsqrt.f32 %v2135_v17  ;;  %v3168_v17 = vld [vmem:[%s4019_s10 + $0x3] ss:$0 sm:$0xff] }
0x1568   : > { %v2348_v62 = vstv %s3158_s5  ;;  %s670_s5 = scalar_lea.vmem %s4030_s21, %s3197_s24 }
0x1574   : > { %v3434_v18 = vpop.eup %3433 }
0x1575   : > { %v2137_v63 = vmul.f32 %v3434_v18, %v2117_v56  ;;  %v2138_v20 = vmul.f32 %v3434_v18, %v2118_v57  ;;  %v3172_v18 = vld [vmem:[%s4021_s12 + $0x58] sm:$0xff] }
0x1576   : > { %3333 = vmatprep.subr.mxu1 %v3172_v18 }
0x1577   : > { %v2145_v0 = vmul.f32 %v3151_v19, %v2137_v63  ;;  %v2146_v22 = vmul.f32 %v3151_v19, %v2138_v20  ;;  %v3169_v20 = vld [vmem:[%s4020_s11 + $0x3] ss:$0 sm:$0xff] }
0x1579   : > { %v2153_v23 = vadd.f32 %v3152_v21, %v2145_v0  ;;  %v2154_v24 = vadd.f32 %v3152_v21, %v2146_v22  ;;  %v3171_v22 = vld [vmem:[%s4021_s12 + $0x50] sm:$0xff] }
0x157b   : > { %3325 = vmatprep.mubr.msk.f32.mxu1 %vm766_vm1, %v2153_v23 }
0x157c   : > { %3326 = vmatmul.mubr.msk.f32.vlgmr.msra.gmra.mxu1 %vm766_vm1, %v2154_v24 }
0x157d   : > { %3334 = vmatpush3.msra.mxu1 %v3172_v18 }
0x157e   : > { %3335 = vmatprep.subr.mxu1 %v3171_v22 }
0x157f   : > { %3336 = vmatpush3.msra.mxu1 %v3171_v22 }
0x1580   : > { %3337 = vmatprep.subr.mxu1 %v3170_v25 }
0x1581   : > { %3338 = vmatpush3.msra.mxu1 %v3170_v25 }
0x163c   : > { %v3327_v27 = vpop.f32.mrf.mxu1 }
0x163d   : > { %v2243_v29 = vadd.f32 %v3327_v27, %v3155_v26 }
0x163e   : > { %v2237_v30 = vpop.f32.mrf.mxu1 }
0x163f   : > { %v3908_v32 = vadd.f32 %v2243_v29, %v1801_v28  ;;  %v2238_v33 = vadd.f32 %v3155_v26, %v2237_v30  ;;  %v2247_v36 = vadd.f32 %v2243_v29, %v3833_v15 }
0x1641   : > { %v2246_v34 = vadd.f32 %v2238_v33, %v3829_v14  ;;  %v3911_v35 = vadd.f32 %v2238_v33, %v1800_v31 }
0x1643   : > { %3330 = vmatprep.mubr.msk.f32.mxu0 %vm919_vm3, %v2246_v34 }
0x1644   : > { %3331 = vmatmul.mubr.msk.f32.vlgmr.msra.gmra.mxu0 %vm919_vm3, %v2247_v36 }
0x1704   : > { %v3332_v11 = vpop.f32.mrf.mxu0 }
0x1705   : > { %v2343_v13 = vadd.f32 %v3332_v11, %v3162_v60 }
0x1706   : > { %v2337_v37 = vpop.f32.mrf.mxu0 }
0x1707   : > { %vm2347_vm11 = vcmp.gt.f32.partialorder %v2343_v13, 0.0  ;;  %v2350_v38 = vmul.f32 %v2348_v62, %v2343_v13  ;;  %v2338_v14 = vadd.f32 %v3162_v60, %v2337_v37 }
0x1709   : > { %vm2346_vm12 = vcmp.gt.f32.partialorder %v2338_v14, 0.0  ;;  %v2349_v39 = vmul.f32 %v2348_v62, %v2338_v14  ;;  %v2352_v40 = vsel %vm2347_vm11, %v2343_v13, %v2350_v38 }
0x170a   : > { %v2358_v42 = vsel %vm766_vm1, %v2352_v40, 0.0 }
0x170b   : > { %v2351_v15 = vsel %vm2346_vm12, %v2338_v14, %v2349_v39 }
0x170c   : > { %v2357_v41 = vsel %vm766_vm1, %v2351_v15, 0.0 }
0x170d   : > { %v2359_v43 = vadd.f32 %v2358_v42, %v2357_v41 }
0x170f   : > { %2360 = vadd.xlane.f32.xlu0 %v2359_v43 }
0x1798   : > { %v2361_v44 = vpop.xlane.xlu0 %2360 }
0x1799   : > { %v2362_v45 = vrot.slane %v2361_v44, 4 }
0x179b   : > { %v2363_v46 = vadd.f32 %v2362_v45, %v2361_v44  ;;  %v3174_v45 = vld [vmem:[%s4022_s13 + $0x3] ss:$0 sm:$0xff] }
0x179d   : > { %v2364_v47 = vrot.slane %v2363_v46, 2 }
0x179f   : > { %v2365_v48 = vadd.f32 %v2364_v47, %v2363_v46 }
0x17a1   : > { %v2366_v49 = vrot.slane %v2365_v48, 1 }
0x17a3   : > { %v2367_v50 = vadd.f32 %v2366_v49, %v2365_v48 }
0x17a5   : > { %3390 = vpush %v2367_v50 }
0x17d6   : > { %s3391_s26 = spop %3390 }
0x17d7   : > { %v2369_v51 = vstv %s3391_s26 }
0x17d8   : > { %v2370_v54 = vmul.f32 0.0078125, %v2369_v51 }
0x17da   : > { %v2371_v55 = vsub.f32 %v2351_v15, %v2370_v54  ;;  %v2372_v56 = vsub.f32 %v2352_v40, %v2370_v54 }
0x17dc   : > { %v2373_v57 = vmul.f32 %v2371_v55, %v2371_v55  ;;  %v2374_v58 = vmul.f32 %v2372_v56, %v2372_v56 }
0x17de   : > { %v2375_v59 = vsel %vm766_vm1, %v2373_v57, 0.0  ;;  %v2376_v61 = vsel %vm766_vm1, %v2374_v58, 0.0 }
0x17df   : > { %v2377_v1 = vadd.f32 %v2376_v61, %v2375_v59 }
0x17e1   : > { %2378 = vadd.xlane.f32.xlu0 %v2377_v1 }
0x186a   : > { %v2379_v2 = vpop.xlane.xlu0 %2378 }
0x186b   : > { %v2380_v3 = vrot.slane %v2379_v2, 4 }
0x186d   : > { %v2381_v4 = vadd.f32 %v2380_v3, %v2379_v2 }
0x186f   : > { %v2382_v52 = vrot.slane %v2381_v4, 2 }
0x1871   : > { %v2383_v5 = vadd.f32 %v2382_v52, %v2381_v4 }
0x1873   : > { %v2384_v7 = vrot.slane %v2383_v5, 1 }
0x1875   : > { %v2385_v53 = vadd.f32 %v2384_v7, %v2383_v5 }
0x1877   : > { %3392 = vpush %v2385_v53 }
0x18a8   : > { %s3393_s27 = spop %3392 }
0x18a9   : > { %v2387_v9 = vstv %s3393_s27 }
0x18aa   : > { %v2388_v10 = vmul.f32 0.0078125, %v2387_v9 }
0x18ac   : > { %v2389_v12 = vadd.f32 1e-06, %v2388_v10 }
0x18ae   : > { %3435 = vrsqrt.f32 %v2389_v12 }
0x18bb   : > { %v3436_v16 = vpop.eup %3435 }
0x18bc   : > { %v2391_v19 = vmul.f32 %v3436_v16, %v2371_v55  ;;  %v2392_v63 = vmul.f32 %v3436_v16, %v2372_v56 }
0x18be   : > { %v2399_v21 = vmul.f32 %v3168_v17, %v2391_v19  ;;  %v2400_v0 = vmul.f32 %v3168_v17, %v2392_v63  ;;  %v3181_v63 = vld [vmem:[%s4025_s16 + $0x18] sm:$0xff] }
0x18bf   : > { %3342 = vmatprep.subr.mxu0 %v3181_v63 }
0x18c0   : > { %v2407_v23 = vadd.f32 %v3169_v20, %v2399_v21  ;;  %v2408_v24 = vadd.f32 %v3169_v20, %v2400_v0  ;;  %3343 = vmatpush3.msra.mxu0 %v3181_v63 }
0x18c2   : > { %v2411_v26 = vrot.slane %v2407_v23, 6  ;;  %v2412_v27 = vrot.slane %v2408_v24, 6 }
0x18c4   : > { %v2413_v28 = vsel %vm1514_vm14, %v2411_v26, %v2412_v27  ;;  %v2418_v29 = vsel %vm1514_vm14, %v2412_v27, 0.0  ;;  %v2417_v30 = vsel %vm1514_vm14, 0.0, %v2411_v26  ;;  %vm2998_vm14 = vcmask 261120  }
0x18c5   : > { %v2422_v31 = vrot.slane %v2413_v28, 2  ;;  %v2424_v33 = vrot.slane %v2418_v29, 2  ;;  %v2421_v34 = vrot.slane %v2417_v30, 2  ;;  %v2432_v11 = vrot.slane %v2417_v30, 4 }
0x18c6   : > { %v2433_v62 = vrot.slane %v2413_v28, 4  ;;  %v2435_v37 = vrot.slane %v2418_v29, 4 }
0x18c7   : > { %v2425_v36 = vsel %vm1091_vm8, %v2422_v31, %v2424_v33  ;;  %v2423_v60 = vsel %vm1091_vm8, %v2421_v34, %v2422_v31  ;;  %v3180_v34 = vld [vmem:[%s4024_s15 + $0x3] ss:$0 sm:$0xff] }
0x18c8   : > { %2428 = vrot.lane.b32.xlu1 %v2425_v36, %s3475_s28  ;;  %2426 = vrot.lane.b32.xlu0 %v2423_v60, %s3475_s28  ;;  %v2434_v13 = vsel %vm926_vm2, %v2432_v11, %v2433_v62  ;;  %v2436_v38 = vsel %vm926_vm2, %v2433_v62, %v2435_v37  ;;  %s3159_s28 = sld [smem:[#allocation2 + $0x7]]  ;;  %v3183_v37 = vld [vmem:[%s4026_s17 + $0x3] ss:$0 sm:$0xff] }
0x18cc   : > { %2437 = vrot.lane.b32.xlu1 %v2434_v13, %s3476_s29  ;;  %v2704_v13 = vld [vmem:[%s4027_s18] sm:$0x3f] }
0x18cd   : > { %3347 = vmatprep.subr.msk.mxu1 %vm1091_vm8, %v2704_v13 }
0x18ce   : > { %v2542_v47 = vstv %s3159_s28 }
0x18d0   : > { %2439 = vrot.lane.b32.xlu1 %v2436_v38, %s3476_s29 }
0x193a   : > { %v2429_v14 = vpop.permute.xlu1 %2428  ;;  %v2427_v39 = vpop.permute.xlu0 %2426 }
0x193b   : > { %v2443_v40 = vsel %vm766_vm1, %v2417_v30, %v2427_v39  ;;  %v2444_v42 = vsel %vm766_vm1, %v2413_v28, %v2429_v14  ;;  %v3179_v30 = vld [vmem:[%s4023_s14 + $0x3] ss:$0 sm:$0xff] }
0x193e   : > { %v2438_v15 = vpop.permute.xlu1 %2437 }
0x193f   : > { %v2445_v41 = vsel %vm682_vm0, %v2443_v40, %v2438_v15 }
0x1940   : > { %3339 = vmatprep.mubr.msk.f32.mxu1 %vm1117_vm9, %v2445_v41 }
0x1942   : > { %v2440_v43 = vpop.permute.xlu1 %2439 }
0x1943   : > { %v2446_v44 = vsel %vm682_vm0, %v2444_v42, %v2440_v43 }
0x1944   : > { %3340 = vmatmul.mubr.msk.f32.vlgmr.msra.gmra.mxu1 %vm1117_vm9, %v2446_v44 }
0x1945   : > { %3348 = vmatpush3.msk.msra.mxu1 %vm1091_vm8, %v2704_v13  ;;  %vm2718_vm8 = vcmask 48128  }
0x1a04   : > { %v3341_v46 = vpop.f32.mrf.mxu1 }
0x1a05   : > { %v2537_v48 = vadd.f32 %v3341_v46, %v3174_v45 }
0x1a06   : > { %v2531_v49 = vpop.f32.mrf.mxu1 }
0x1a07   : > { %vm2541_vm2 = vcmp.gt.f32.partialorder %v2537_v48, 0.0  ;;  %v2544_v50 = vmul.f32 %v2542_v47, %v2537_v48  ;;  %v2532_v51 = vadd.f32 %v3174_v45, %v2531_v49 }
0x1a09   : > { %vm2540_vm3 = vcmp.gt.f32.partialorder %v2532_v51, 0.0  ;;  %v2543_v54 = vmul.f32 %v2542_v47, %v2532_v51  ;;  %v2546_v55 = vsel %vm2541_vm2, %v2537_v48, %v2544_v50 }
0x1a0a   : > { %v2552_v58 = vsel %vm766_vm1, %v2546_v55, 0.0 }
0x1a0b   : > { %v2545_v56 = vsel %vm2540_vm3, %v2532_v51, %v2543_v54 }
0x1a0c   : > { %v2551_v57 = vsel %vm766_vm1, %v2545_v56, 0.0 }
0x1a0d   : > { %v2553_v59 = vadd.f32 %v2552_v58, %v2551_v57 }
0x1a0f   : > { %2554 = vadd.xlane.f32.xlu0 %v2553_v59 }
0x1a98   : > { %v2555_v61 = vpop.xlane.xlu0 %2554 }
0x1a99   : > { %v2556_v1 = vrot.slane %v2555_v61, 4 }
0x1a9b   : > { %v2557_v2 = vadd.f32 %v2556_v1, %v2555_v61 }
0x1a9d   : > { %v2558_v3 = vrot.slane %v2557_v2, 2 }
0x1a9f   : > { %v2559_v4 = vadd.f32 %v2558_v3, %v2557_v2 }
0x1aa1   : > { %v2560_v52 = vrot.slane %v2559_v4, 1 }
0x1aa3   : > { %v2561_v5 = vadd.f32 %v2560_v52, %v2559_v4 }
0x1aa5   : > { %3394 = vpush %v2561_v5 }
0x1ad6   : > { %s3395_s30 = spop %3394 }
0x1ad7   : > { %v2563_v7 = vstv %s3395_s30  ;;  %s3186_s30 = sld [smem:[#allocation2 + $0x8]] }
0x1ad8   : > { %v2564_v53 = vmul.f32 0.0078125, %v2563_v7 }
0x1ada   : > { %v2565_v9 = vsub.f32 %v2545_v56, %v2564_v53  ;;  %v2566_v10 = vsub.f32 %v2546_v55, %v2564_v53 }
0x1adc   : > { %v2567_v12 = vmul.f32 %v2565_v9, %v2565_v9  ;;  %v2568_v16 = vmul.f32 %v2566_v10, %v2566_v10 }
0x1add   : > { %v2699_v40 = vstv %s3186_s30 }
0x1ade   : > { %v2569_v17 = vsel %vm766_vm1, %v2567_v12, 0.0  ;;  %v2570_v18 = vsel %vm766_vm1, %v2568_v16, 0.0 }
0x1adf   : > { %v2571_v19 = vadd.f32 %v2570_v18, %v2569_v17 }
0x1ae1   : > { %2572 = vadd.xlane.f32.xlu1 %v2571_v19 }
0x1b6a   : > { %v2573_v20 = vpop.xlane.xlu1 %2572 }
0x1b6b   : > { %v2574_v21 = vrot.slane %v2573_v20, 4 }
0x1b6d   : > { %v2575_v0 = vadd.f32 %v2574_v21, %v2573_v20 }
0x1b6f   : > { %v2576_v22 = vrot.slane %v2575_v0, 2 }
0x1b71   : > { %v2577_v23 = vadd.f32 %v2576_v22, %v2575_v0 }
0x1b73   : > { %v2578_v24 = vrot.slane %v2577_v23, 1 }
0x1b75   : > { %v2579_v25 = vadd.f32 %v2578_v24, %v2577_v23 }
0x1b77   : > { %3396 = vpush %v2579_v25 }
0x1ba8   : > { %s3397_s1 = spop %3396 }
0x1ba9   : > { %v2581_v26 = vstv %s3397_s1  ;;  %s3477_s1 = smov 124  }
0x1baa   : > { %v2582_v27 = vmul.f32 0.0078125, %v2581_v26 }
0x1bac   : > { %v2583_v28 = vadd.f32 1e-06, %v2582_v27 }
0x1bae   : > { %3437 = vrsqrt.f32 %v2583_v28 }
0x1bbb   : > { %v3438_v29 = vpop.eup %3437 }
0x1bbc   : > { %v2585_v31 = vmul.f32 %v3438_v29, %v2565_v9  ;;  %v2586_v33 = vmul.f32 %v3438_v29, %v2566_v10 }
0x1bbe   : > { %v2593_v36 = vmul.f32 %v3179_v30, %v2585_v31  ;;  %v2594_v60 = vmul.f32 %v3179_v30, %v2586_v33 }
0x1bc0   : > { %v2601_v11 = vadd.f32 %v3180_v34, %v2593_v36  ;;  %v2602_v62 = vadd.f32 %v3180_v34, %v2594_v60 }
0x1bc2   : > { %3344 = vmatprep.mubr.msk.f32.mxu0 %vm766_vm1, %v2601_v11 }
0x1bc3   : > { %3345 = vmatmul.mubr.msk.f32.vlgmr.msra.gmra.mxu0 %vm766_vm1, %v2602_v62 }
0x1c83   : > { %v3346_v38 = vpop.f32.mrf.mxu0 }
0x1c84   : > { %v2691_v14 = vadd.f32 %v3346_v38, %v3183_v37 }
0x1c85   : > { %v2685_v39 = vpop.f32.mrf.mxu0 }
0x1c86   : > { %v2695_v15 = vadd.f32 %v2691_v14, %v3908_v32  ;;  %v2686_v41 = vadd.f32 %v3183_v37, %v2685_v39  ;;  %v2815_v32 = vld [vmem:[%s4029_s20] sm:$0xff] }
0x1c87   : > { %3352 = vmatprep.subr.mxu0 %v2815_v32  ;;  %3357 = vmatprep.subr.mxu1 %v2815_v32 }
0x1c88   : > { %v2694_v42 = vadd.f32 %v2686_v41, %v3911_v35  ;;  %vm2698_vm9 = vcmp.gt.f32.partialorder %v2695_v15, 0.0  ;;  %v2701_v43 = vmul.f32 %v2699_v40, %v2695_v15  ;;  %3353 = vmatpush3.msra.mxu0 %v2815_v32  ;;  %v3187_v35 = vld [vmem:[%s4028_s19] ss:$0 sm:$0xff] }
0x1c8a   : > { %v2703_v44 = vsel %vm2698_vm9, %v2695_v15, %v2701_v43  ;;  %vm2697_vm13 = vcmp.gt.f32.partialorder %v2694_v42, 0.0  ;;  %v2700_v45 = vmul.f32 %v2699_v40, %v2694_v42 }
0x1c8b   : > { %2716 = vrot.lane.b32.xlu1 %v2703_v44, %s3477_s1 }
0x1c8c   : > { %v2702_v46 = vsel %vm2697_vm13, %v2694_v42, %v2700_v45 }
0x1c8d   : > { %2714 = vrot.lane.b32.xlu0 %v2702_v46, %s3477_s1 }
0x1cfd   : > { %v2717_v48 = vpop.permute.xlu1 %2716 }
0x1cff   : > { %v2715_v47 = vpop.permute.xlu0 %2714 }
0x1d00   : > { %3349 = vmatprep.mubr.msk.f32.mxu1 %vm2718_vm8, %v2715_v47 }
0x1d01   : > { %3350 = vmatmul.mubr.msk.f32.vlgmr.msra.gmra.mxu1 %vm2718_vm8, %v2717_v48 }
0x1d02   : > { %3358 = vmatpush3.msra.mxu1 %v2815_v32 }
0x1dc1   : > { %v3351_v49 = vpop.f32.mrf.mxu1 }
0x1dc2   : > { %v2798_v50 = vadd.f32 %v3351_v49, %v3187_v35 }
0x1dc3   : > { %v2792_v51 = vpop.f32.mrf.mxu1 }
0x1dc4   : > { %v2802_v54 = vsub.f32 0.0, %v2798_v50  ;;  %v2793_v55 = vadd.f32 %v3187_v35, %v2792_v51 }
0x1dc6   : > { %v2805_v56 = vmul.f32 1.442695, %v2802_v54  ;;  %v2801_v57 = vsub.f32 0.0, %v2793_v55 }
0x1dc8   : > { %3439 = vpow2.f32 %v2805_v56  ;;  %v2803_v58 = vmul.f32 1.442695, %v2801_v57 }
0x1dca   : > { %3441 = vpow2.f32 %v2803_v58 }
0x1dd5   : > { %v3440_v59 = vpop.eup %3439 }
0x1dd6   : > { %v2808_v61 = vadd.f32 1.0, %v3440_v59 }
0x1dd7   : > { %v3442_v1 = vpop.eup %3441 }
0x1dd8   : > { %3443 = vrcp.f32 %v2808_v61  ;;  %v2807_v2 = vadd.f32 1.0, %v3442_v1 }
0x1dda   : > { %3445 = vrcp.f32 %v2807_v2 }
0x1de5   : > { %v3444_v3 = vpop.eup %3443 }
0x1de6   : > { %2901 = vrot.lane.b32.xlu1 %v3444_v3, %s3478_s0  ;;  %v2814_v5 = vmul.f32 %v3444_v3, %v3638_v6 }
0x1de7   : > { %v3446_v4 = vpop.eup %3445 }
0x1de8   : > { %2899 = vrot.lane.b32.xlu0 %v3446_v4, %s3478_s0  ;;  %v2813_v52 = vmul.f32 %v3446_v4, %v3640_v8 }
0x1dea   : > { %3354 = vmatprep.mubr.msk.f32.mxu0 %vm766_vm1, %v2813_v52 }
0x1deb   : > { %3355 = vmatmul.mubr.msk.f32.vlgmr.msra.gmra.mxu0 %vm766_vm1, %v2814_v5 }
0x1e58   : > { %v2902_v7 = vpop.permute.xlu1 %2901 }
0x1e59   : > { %v2906_v10 = vmul.f32 %v2902_v7, %v3638_v6 }
0x1e5a   : > { %v2900_v53 = vpop.permute.xlu0 %2899 }
0x1e5b   : > { %v2905_v9 = vmul.f32 %v2900_v53, %v3640_v8 }
0x1e5d   : > { %3359 = vmatprep.mubr.msk.f32.mxu1 %vm766_vm1, %v2905_v9 }
0x1e5e   : > { %3360 = vmatmul.mubr.msk.f32.vlgmr.msra.gmra.mxu1 %vm766_vm1, %v2906_v10 }
0x1eab   : > { %v3356_v17 = vpop.f32.mrf.mxu0 }
0x1ead   : > { %v2888_v18 = vpop.f32.mrf.mxu0 }
0x1f1e   : > { %v3361_v12 = vpop.f32.mrf.mxu1 }
0x1f1f   : > { %2992 = vrot.lane.b32.xlu1 %v3361_v12, %s3476_s29 }
0x1f20   : > { %v2979_v16 = vpop.f32.mrf.mxu1 }
0x1f21   : > { %2990 = vrot.lane.b32.xlu0 %v2979_v16, %s3476_s29 }
0x1f91   : > { %v2993_v8 = vpop.permute.xlu1 %2992 }
0x1f92   : > { %v2997_v6 = vsel %vm682_vm0, %v3356_v17, %v2993_v8 }
0x1f93   : > { %3000 = vst.msk [vmem:[%s670_s5 + $0x8] sm:$0xff] %vm2998_vm14, %v2997_v6  ;;  %v2991_v19 = vpop.permute.xlu0 %2990 }
0x1f94   : > { %v2996_v63 = vsel %vm682_vm0, %v2888_v18, %v2991_v19 }
0x1f95   : > { %2999 = vst.msk [vmem:[%s670_s5] sm:$0xff] %vm2998_vm14, %v2996_v63 }
0x1f96 PF: > { %s32_s2 = sadd.s32 1, %s3472_s2  }
0x1f97   : > { %p29_p1 = scmp.ge.s32.totalorder %s32_s2, 4  }
0x1f99   :  { %31 = sbr.rel (!%p29_p1) target bundleno = 8 (0x8), region = 169 }
0x1f9e   :  { %3022 = vsyncpa [#allocation3], 1 }
0x1f9f   :  { %3024 = vsyncpa [#allocation3 + $0x1], 1 }

</bundles_post_ra>
